<compile_context>
chip_gen: v6e
topology: v6e:2x2x1
jax: 0.10.0
libtpu: 0.0.40
codegen_flags: <defaults>
</compile_context>

<pallas_src>
import functools

import jax
import jax.numpy as jnp
import numpy as np
from jax import lax
from jax.experimental import pallas as pl
from jax.experimental.pallas import tpu as pltpu


# ----------------------------------------------------------------------------
# Host-side constant operators (numpy; shapes are static inside jit)
# ----------------------------------------------------------------------------

def _interp_matrix(s_in, s_out):
    """(s_out, s_in) bilinear interpolation matrix, align_corners=True."""
    if s_in == 1:
        coords = np.zeros((s_out,), np.float32)
    else:
        coords = np.arange(s_out, dtype=np.float32) * (s_in - 1) / (s_out - 1)
    lo = np.clip(np.floor(coords).astype(np.int32), 0, s_in - 1)
    hi = np.minimum(lo + 1, s_in - 1)
    w = (coords - lo).astype(np.float32)
    m = np.zeros((s_out, s_in), np.float32)
    m[np.arange(s_out), lo] += 1.0 - w
    m[np.arange(s_out), hi] += w
    return m


def _tap_tables(n, ho, wo):
    """Per-tap lane offsets and (9, N*Ho*Wo) f32 boundary masks (SAME padding)."""
    s = ho * wo
    yy = np.arange(ho)[:, None]
    xx = np.arange(wo)[None, :]
    offsets, masks = [], []
    for dy in (-1, 0, 1):
        for dx in (-1, 0, 1):
            offsets.append(dy * wo + dx)
            ok = ((yy + dy >= 0) & (yy + dy < ho)
                  & (xx + dx >= 0) & (xx + dx < wo))
            masks.append(np.tile(ok.astype(np.float32).reshape(s), n))
    return tuple(offsets), np.stack(masks, axis=0)   # (9, N*S)


# ----------------------------------------------------------------------------
# Fused Pallas kernel
# ----------------------------------------------------------------------------

def _up_kernel(x_ref, up_ref, m_ref, w1_ref, g1_ref, b1_ref,
               w2_ref, g2_ref, b2_ref, o_ref, *, offsets, total_lanes):
    f32 = jnp.float32

    def conv3x3(feat, w_ref):
        # feat: (Cp_in, L).  Accumulate 9 small matmuls; taps are built by a hardware
        # lane rotation (pltpu.roll) plus a precomputed boundary mask.  Cross-sample /
        # out-of-bounds wraparound lanes are zeroed by the mask.
        acc = None
        for t, off in enumerate(offsets):
            if off == 0:                       # center tap: no shift, mask is all-ones
                tap_in = feat
            else:
                sh = (-off) % total_lanes      # result[:, p] = feat[:, p + off]
                tap_in = pltpu.roll(feat, shift=sh, axis=1) * m_ref[t:t + 1, :]
            y = jnp.dot(w_ref[t], tap_in, preferred_element_type=f32)
            acc = y if acc is None else acc + y
        return acc

    def bn_relu(y, g_ref, b_ref):
        # Exact train-mode batch stats: per-channel mean / biased var over all N*S lanes.
        mu = jnp.mean(y, axis=1, keepdims=True)
        var = jnp.mean(jnp.square(y - mu), axis=1, keepdims=True)
        yn = (y - mu) * lax.rsqrt(var + 1e-5)
        return jnp.maximum(yn * g_ref[...] + b_ref[...], 0.0)

    # 1) bilinear x2 upsample (align_corners=True): one lane-dense matmul.
    up = jnp.dot(x_ref[...], up_ref[...], preferred_element_type=f32)     # (CinP, L)

    # 2) conv1 -> BN1 -> ReLU   3) conv2 -> BN2 -> ReLU
    a1 = bn_relu(conv3x3(up, w1_ref), g1_ref, b1_ref)                     # (CmidP, L)
    o_ref[...] = bn_relu(conv3x3(a1, w2_ref), g2_ref, b2_ref)             # (CoutP, L)


# ----------------------------------------------------------------------------
# Wrapper
# ----------------------------------------------------------------------------

def up_forward(x_nchw, w1_oihw, g1, b1, w2_oihw, g2, b2):
    """Up.forward: NCHW in, NCHW out. Conv weights in PyTorch OIHW layout."""
    N, Cin, H, W = x_nchw.shape
    Cmid = int(w1_oihw.shape[0])
    Cout = int(w2_oihw.shape[0])
    Ho, Wo = 2 * H, 2 * W
    S = Ho * Wo
    L = N * S

    def rup8(c):
        return ((c + 7) // 8) * 8

    CinP, CmidP, CoutP = rup8(Cin), rup8(Cmid), rup8(Cout)

    # Host-side constants: lane-batched upsample operator + tap offsets/masks.
    up_op_t = np.kron(_interp_matrix(H, Ho), _interp_matrix(W, Wo)).T     # (H*W, S)
    up_big = np.kron(np.eye(N, dtype=np.float32), up_op_t)                # (N*HW, L)
    offsets, masks = _tap_tables(N, Ho, Wo)                               # (9, L)

    # Lane-batched activations: (Cin, N*H*W), channels padded to a multiple of 8.
    x_cl = jnp.transpose(x_nchw, (1, 0, 2, 3)).reshape(Cin, N * H * W)
    x_cl = jnp.pad(x_cl.astype(jnp.float32), ((0, CinP - Cin), (0, 0)))

    def conv_taps(w_oihw, cout_p, cin_p):
        o, i = w_oihw.shape[0], w_oihw.shape[1]
        taps = jnp.transpose(w_oihw, (2, 3, 0, 1)).reshape(9, o, i).astype(jnp.float32)
        return jnp.pad(taps, ((0, 0), (0, cout_p - o), (0, cin_p - i)))

    def pad_param(p, cp, fill):
        return jnp.pad(p.astype(jnp.float32), (0, cp - p.shape[0]),
                       constant_values=fill).reshape(cp, 1)

    w1_taps = conv_taps(w1_oihw, CmidP, CinP)                             # (9, CmidP, CinP)
    w2_taps = conv_taps(w2_oihw, CoutP, CmidP)                            # (9, CoutP, CmidP)
    g1p, b1p = pad_param(g1, CmidP, 1.0), pad_param(b1, CmidP, 0.0)
    g2p, b2p = pad_param(g2, CoutP, 1.0), pad_param(b2, CoutP, 0.0)

    kernel = functools.partial(_up_kernel, offsets=offsets, total_lanes=L)
    vmem = pl.BlockSpec(memory_space=pltpu.MemorySpace.VMEM)

    out_pad = pl.pallas_call(
        kernel,
        out_shape=jax.ShapeDtypeStruct((CoutP, L), jnp.float32),   # tile-aligned slab
        in_specs=[vmem] * 9,
        out_specs=vmem,
    )(x_cl, jnp.asarray(up_big), jnp.asarray(masks),
      w1_taps, g1p, b1p, w2_taps, g2p, b2p)

    # (CoutP, N*S) lane-batched slab -> NCHW (cheap slice / reshape / transpose in XLA).
    return out_pad[:Cout].reshape(Cout, N, Ho, Wo).transpose(1, 0, 2, 3)


# ----------------------------------------------------------------------------
# Pure-JAX reference (independent formulation, for a correctness check)
# ----------------------------------------------------------------------------

def ref_forward(x, w1_oihw, g1, b1, w2_oihw, g2, b2):
    N, Cin, H, W = x.shape
    ah = _interp_matrix(H, 2 * H)
    aw = _interp_matrix(W, 2 * W)
    xu = jnp.einsum("oh,nchw->ncow", ah, x.astype(jnp.float32))
    xu = jnp.einsum("pw,ncow->ncop", aw, xu)

    def conv_bn_relu(t, w, g, b):
        y = lax.conv_general_dilated(
            t, w, window_strides=(1, 1), padding="SAME",
            dimension_numbers=("NCHW", "OIHW", "NCHW"))
        m = jnp.mean(y, axis=(0, 2, 3), keepdims=True)
        v = jnp.mean(jnp.square(y - m), axis=(0, 2, 3), keepdims=True)
        yn = ((y - m) * lax.rsqrt(v + 1e-5) * g.reshape(1, -1, 1, 1)
              + b.reshape(1, -1, 1, 1))
        return jnp.maximum(yn, 0.0)

    t = conv_bn_relu(xu, w1_oihw, g1, b1)
    return conv_bn_relu(t, w2_oihw, g2, b2)


# ----------------------------------------------------------------------------
# Main
# ----------------------------------------------------------------------------

if __name__ == "__main__":
    key = jax.random.PRNGKey(0)
    k_x, k_w1, k_w2 = jax.random.split(key, 3)

    # Up(in_channels=8, out_channels=4, bilinear=True) -> mid_channels = 4
    N, Cin, H, W = 2, 8, 8, 8
    Cout = 4
    Cmid = Cin // 2

    x = jax.random.normal(k_x, (N, Cin, H, W), jnp.float32)

    # PyTorch-native OIHW conv weights; BatchNorm affine init (gamma=1, beta=0).
    w1 = 0.1 * jax.random.normal(k_w1, (Cmid, Cin, 3, 3), jnp.float32)
    w2 = 0.1 * jax.random.normal(k_w2, (Cout, Cmid, 3, 3), jnp.float32)
    g1 = jnp.ones((Cmid,), jnp.float32)
    b1 = jnp.zeros((Cmid,), jnp.float32)
    g2 = jnp.ones((Cout,), jnp.float32)
    b2 = jnp.zeros((Cout,), jnp.float32)

    fwd = jax.jit(up_forward)
    out = jax.block_until_ready(fwd(x, w1, g1, b1, w2, g2, b2))

    ref = ref_forward(x, w1, g1, b1, w2, g2, b2)
    assert out.shape == (N, Cout, 2 * H, 2 * W), out.shape
    np.testing.assert_allclose(np.asarray(out), np.asarray(ref), atol=1e-3, rtol=1e-3)

    print("KERNEL_OK")
</pallas_src>

<mosaic_0001>
module attributes {stable_mosaic.version = 11 : i64} {
  func.func @_up_kernel(%arg0: memref<8x128xf32, #tpu.memory_space<vmem>>, %arg1: memref<128x512xf32, #tpu.memory_space<vmem>>, %arg2: memref<9x512xf32, #tpu.memory_space<vmem>>, %arg3: memref<9x8x8xf32, #tpu.memory_space<vmem>>, %arg4: memref<8x1xf32, #tpu.memory_space<vmem>>, %arg5: memref<8x1xf32, #tpu.memory_space<vmem>>, %arg6: memref<9x8x8xf32, #tpu.memory_space<vmem>>, %arg7: memref<8x1xf32, #tpu.memory_space<vmem>>, %arg8: memref<8x1xf32, #tpu.memory_space<vmem>>, %arg9: memref<8x512xf32, #tpu.memory_space<vmem>>) attributes {dimension_semantics = [], scalar_prefetch = 0 : i64, scratch_operands = 0 : i64, tpu.core_type = #tpu.core_type<tc>} {
    %c0 = arith.constant 0 : index
    %c0_0 = arith.constant 0 : index
    %0 = vector.load %arg0[%c0, %c0_0] : memref<8x128xf32, #tpu.memory_space<vmem>>, vector<8x128xf32>
    %c0_1 = arith.constant 0 : index
    %c0_2 = arith.constant 0 : index
    %1 = vector.load %arg1[%c0_1, %c0_2] : memref<128x512xf32, #tpu.memory_space<vmem>>, vector<128x512xf32>
    %cst = arith.constant dense<0.000000e+00> : vector<8x512xf32>
    %2 = tpu.matmul %0, %1, %cst {dimension_numbers = #tpu.dot_dimension_numbers<[1], [0], [0], [1], [0, 0, 1, 1], [], []>} : vector<8x128xf32>, vector<128x512xf32>, vector<8x512xf32> -> vector<8x512xf32>
    %c17_i32 = arith.constant 17 : i32
    %3 = tpu.dynamic_rotate %2 by %c17_i32 dim 1 : vector<8x512xf32>, i32 -> vector<8x512xf32>
    %c0_3 = arith.constant 0 : index
    %c0_4 = arith.constant 0 : index
    %4 = vector.load %arg2[%c0_3, %c0_4] : memref<9x512xf32, #tpu.memory_space<vmem>>, vector<1x512xf32>
    %5 = vector.broadcast %4 : vector<1x512xf32> to vector<8x512xf32>
    %6 = arith.mulf %3, %5 : vector<8x512xf32>
    %c0_5 = arith.constant 0 : index
    %c0_6 = arith.constant 0 : index
    %c0_7 = arith.constant 0 : index
    %7 = vector.load %arg3[%c0_5, %c0_6, %c0_7] : memref<9x8x8xf32, #tpu.memory_space<vmem>>, vector<1x8x8xf32>
    %8 = vector.shape_cast %7 : vector<1x8x8xf32> to vector<8x8xf32>
    %cst_8 = arith.constant dense<0.000000e+00> : vector<8x512xf32>
    %9 = tpu.matmul %8, %6, %cst_8 {dimension_numbers = #tpu.dot_dimension_numbers<[1], [0], [0], [1], [0, 0, 1, 1], [], []>} : vector<8x8xf32>, vector<8x512xf32>, vector<8x512xf32> -> vector<8x512xf32>
    %c16_i32 = arith.constant 16 : i32
    %10 = tpu.dynamic_rotate %2 by %c16_i32 dim 1 : vector<8x512xf32>, i32 -> vector<8x512xf32>
    %c1 = arith.constant 1 : index
    %c0_9 = arith.constant 0 : index
    %11 = vector.load %arg2[%c1, %c0_9] : memref<9x512xf32, #tpu.memory_space<vmem>>, vector<1x512xf32>
    %12 = vector.broadcast %11 : vector<1x512xf32> to vector<8x512xf32>
    %13 = arith.mulf %10, %12 : vector<8x512xf32>
    %c1_10 = arith.constant 1 : index
    %c0_11 = arith.constant 0 : index
    %c0_12 = arith.constant 0 : index
    %14 = vector.load %arg3[%c1_10, %c0_11, %c0_12] : memref<9x8x8xf32, #tpu.memory_space<vmem>>, vector<1x8x8xf32>
    %15 = vector.shape_cast %14 : vector<1x8x8xf32> to vector<8x8xf32>
    %cst_13 = arith.constant dense<0.000000e+00> : vector<8x512xf32>
    %16 = tpu.matmul %15, %13, %cst_13 {dimension_numbers = #tpu.dot_dimension_numbers<[1], [0], [0], [1], [0, 0, 1, 1], [], []>} : vector<8x8xf32>, vector<8x512xf32>, vector<8x512xf32> -> vector<8x512xf32>
    %17 = arith.addf %9, %16 : vector<8x512xf32>
    %c15_i32 = arith.constant 15 : i32
    %18 = tpu.dynamic_rotate %2 by %c15_i32 dim 1 : vector<8x512xf32>, i32 -> vector<8x512xf32>
    %c2 = arith.constant 2 : index
    %c0_14 = arith.constant 0 : index
    %19 = vector.load %arg2[%c2, %c0_14] : memref<9x512xf32, #tpu.memory_space<vmem>>, vector<1x512xf32>
    %20 = vector.broadcast %19 : vector<1x512xf32> to vector<8x512xf32>
    %21 = arith.mulf %18, %20 : vector<8x512xf32>
    %c2_15 = arith.constant 2 : index
    %c0_16 = arith.constant 0 : index
    %c0_17 = arith.constant 0 : index
    %22 = vector.load %arg3[%c2_15, %c0_16, %c0_17] : memref<9x8x8xf32, #tpu.memory_space<vmem>>, vector<1x8x8xf32>
    %23 = vector.shape_cast %22 : vector<1x8x8xf32> to vector<8x8xf32>
    %cst_18 = arith.constant dense<0.000000e+00> : vector<8x512xf32>
    %24 = tpu.matmul %23, %21, %cst_18 {dimension_numbers = #tpu.dot_dimension_numbers<[1], [0], [0], [1], [0, 0, 1, 1], [], []>} : vector<8x8xf32>, vector<8x512xf32>, vector<8x512xf32> -> vector<8x512xf32>
    %25 = arith.addf %17, %24 : vector<8x512xf32>
    %c1_i32 = arith.constant 1 : i32
    %26 = tpu.dynamic_rotate %2 by %c1_i32 dim 1 : vector<8x512xf32>, i32 -> vector<8x512xf32>
    %c3 = arith.constant 3 : index
    %c0_19 = arith.constant 0 : index
    %27 = vector.load %arg2[%c3, %c0_19] : memref<9x512xf32, #tpu.memory_space<vmem>>, vector<1x512xf32>
    %28 = vector.broadcast %27 : vector<1x512xf32> to vector<8x512xf32>
    %29 = arith.mulf %26, %28 : vector<8x512xf32>
    %c3_20 = arith.constant 3 : index
    %c0_21 = arith.constant 0 : index
    %c0_22 = arith.constant 0 : index
    %30 = vector.load %arg3[%c3_20, %c0_21, %c0_22] : memref<9x8x8xf32, #tpu.memory_space<vmem>>, vector<1x8x8xf32>
    %31 = vector.shape_cast %30 : vector<1x8x8xf32> to vector<8x8xf32>
    %cst_23 = arith.constant dense<0.000000e+00> : vector<8x512xf32>
    %32 = tpu.matmul %31, %29, %cst_23 {dimension_numbers = #tpu.dot_dimension_numbers<[1], [0], [0], [1], [0, 0, 1, 1], [], []>} : vector<8x8xf32>, vector<8x512xf32>, vector<8x512xf32> -> vector<8x512xf32>
    %33 = arith.addf %25, %32 : vector<8x512xf32>
    %c4 = arith.constant 4 : index
    %c0_24 = arith.constant 0 : index
    %c0_25 = arith.constant 0 : index
    %34 = vector.load %arg3[%c4, %c0_24, %c0_25] : memref<9x8x8xf32, #tpu.memory_space<vmem>>, vector<1x8x8xf32>
    %35 = vector.shape_cast %34 : vector<1x8x8xf32> to vector<8x8xf32>
    %cst_26 = arith.constant dense<0.000000e+00> : vector<8x512xf32>
    %36 = tpu.matmul %35, %2, %cst_26 {dimension_numbers = #tpu.dot_dimension_numbers<[1], [0], [0], [1], [0, 0, 1, 1], [], []>} : vector<8x8xf32>, vector<8x512xf32>, vector<8x512xf32> -> vector<8x512xf32>
    %37 = arith.addf %33, %36 : vector<8x512xf32>
    %c511_i32 = arith.constant 511 : i32
    %38 = tpu.dynamic_rotate %2 by %c511_i32 dim 1 : vector<8x512xf32>, i32 -> vector<8x512xf32>
    %c5 = arith.constant 5 : index
    %c0_27 = arith.constant 0 : index
    %39 = vector.load %arg2[%c5, %c0_27] : memref<9x512xf32, #tpu.memory_space<vmem>>, vector<1x512xf32>
    %40 = vector.broadcast %39 : vector<1x512xf32> to vector<8x512xf32>
    %41 = arith.mulf %38, %40 : vector<8x512xf32>
    %c5_28 = arith.constant 5 : index
    %c0_29 = arith.constant 0 : index
    %c0_30 = arith.constant 0 : index
    %42 = vector.load %arg3[%c5_28, %c0_29, %c0_30] : memref<9x8x8xf32, #tpu.memory_space<vmem>>, vector<1x8x8xf32>
    %43 = vector.shape_cast %42 : vector<1x8x8xf32> to vector<8x8xf32>
    %cst_31 = arith.constant dense<0.000000e+00> : vector<8x512xf32>
    %44 = tpu.matmul %43, %41, %cst_31 {dimension_numbers = #tpu.dot_dimension_numbers<[1], [0], [0], [1], [0, 0, 1, 1], [], []>} : vector<8x8xf32>, vector<8x512xf32>, vector<8x512xf32> -> vector<8x512xf32>
    %45 = arith.addf %37, %44 : vector<8x512xf32>
    %c497_i32 = arith.constant 497 : i32
    %46 = tpu.dynamic_rotate %2 by %c497_i32 dim 1 : vector<8x512xf32>, i32 -> vector<8x512xf32>
    %c6 = arith.constant 6 : index
    %c0_32 = arith.constant 0 : index
    %47 = vector.load %arg2[%c6, %c0_32] : memref<9x512xf32, #tpu.memory_space<vmem>>, vector<1x512xf32>
    %48 = vector.broadcast %47 : vector<1x512xf32> to vector<8x512xf32>
    %49 = arith.mulf %46, %48 : vector<8x512xf32>
    %c6_33 = arith.constant 6 : index
    %c0_34 = arith.constant 0 : index
    %c0_35 = arith.constant 0 : index
    %50 = vector.load %arg3[%c6_33, %c0_34, %c0_35] : memref<9x8x8xf32, #tpu.memory_space<vmem>>, vector<1x8x8xf32>
    %51 = vector.shape_cast %50 : vector<1x8x8xf32> to vector<8x8xf32>
    %cst_36 = arith.constant dense<0.000000e+00> : vector<8x512xf32>
    %52 = tpu.matmul %51, %49, %cst_36 {dimension_numbers = #tpu.dot_dimension_numbers<[1], [0], [0], [1], [0, 0, 1, 1], [], []>} : vector<8x8xf32>, vector<8x512xf32>, vector<8x512xf32> -> vector<8x512xf32>
    %53 = arith.addf %45, %52 : vector<8x512xf32>
    %c496_i32 = arith.constant 496 : i32
    %54 = tpu.dynamic_rotate %2 by %c496_i32 dim 1 : vector<8x512xf32>, i32 -> vector<8x512xf32>
    %c7 = arith.constant 7 : index
    %c0_37 = arith.constant 0 : index
    %55 = vector.load %arg2[%c7, %c0_37] : memref<9x512xf32, #tpu.memory_space<vmem>>, vector<1x512xf32>
    %56 = vector.broadcast %55 : vector<1x512xf32> to vector<8x512xf32>
    %57 = arith.mulf %54, %56 : vector<8x512xf32>
    %c7_38 = arith.constant 7 : index
    %c0_39 = arith.constant 0 : index
    %c0_40 = arith.constant 0 : index
    %58 = vector.load %arg3[%c7_38, %c0_39, %c0_40] : memref<9x8x8xf32, #tpu.memory_space<vmem>>, vector<1x8x8xf32>
    %59 = vector.shape_cast %58 : vector<1x8x8xf32> to vector<8x8xf32>
    %cst_41 = arith.constant dense<0.000000e+00> : vector<8x512xf32>
    %60 = tpu.matmul %59, %57, %cst_41 {dimension_numbers = #tpu.dot_dimension_numbers<[1], [0], [0], [1], [0, 0, 1, 1], [], []>} : vector<8x8xf32>, vector<8x512xf32>, vector<8x512xf32> -> vector<8x512xf32>
    %61 = arith.addf %53, %60 : vector<8x512xf32>
    %c495_i32 = arith.constant 495 : i32
    %62 = tpu.dynamic_rotate %2 by %c495_i32 dim 1 : vector<8x512xf32>, i32 -> vector<8x512xf32>
    %c8 = arith.constant 8 : index
    %c0_42 = arith.constant 0 : index
    %63 = vector.load %arg2[%c8, %c0_42] : memref<9x512xf32, #tpu.memory_space<vmem>>, vector<1x512xf32>
    %64 = vector.broadcast %63 : vector<1x512xf32> to vector<8x512xf32>
    %65 = arith.mulf %62, %64 : vector<8x512xf32>
    %c8_43 = arith.constant 8 : index
    %c0_44 = arith.constant 0 : index
    %c0_45 = arith.constant 0 : index
    %66 = vector.load %arg3[%c8_43, %c0_44, %c0_45] : memref<9x8x8xf32, #tpu.memory_space<vmem>>, vector<1x8x8xf32>
    %67 = vector.shape_cast %66 : vector<1x8x8xf32> to vector<8x8xf32>
    %cst_46 = arith.constant dense<0.000000e+00> : vector<8x512xf32>
    %68 = tpu.matmul %67, %65, %cst_46 {dimension_numbers = #tpu.dot_dimension_numbers<[1], [0], [0], [1], [0, 0, 1, 1], [], []>} : vector<8x8xf32>, vector<8x512xf32>, vector<8x512xf32> -> vector<8x512xf32>
    %69 = arith.addf %61, %68 : vector<8x512xf32>
    %cst_47 = arith.constant dense<0.000000e+00> : vector<8xf32>
    %70 = vector.multi_reduction <add>, %69, %cst_47 [1] : vector<8x512xf32> to vector<8xf32>
    %71 = vector.shape_cast %70 : vector<8xf32> to vector<8x1xf32>
    %cst_48 = arith.constant 5.120000e+02 : f32
    %72 = vector.broadcast %cst_48 : f32 to vector<8x1xf32>
    %73 = arith.divf %71, %72 : vector<8x1xf32>
    %74 = vector.broadcast %73 : vector<8x1xf32> to vector<8x512xf32>
    %75 = arith.subf %69, %74 : vector<8x512xf32>
    %76 = arith.mulf %75, %75 : vector<8x512xf32>
    %cst_49 = arith.constant dense<0.000000e+00> : vector<8xf32>
    %77 = vector.multi_reduction <add>, %76, %cst_49 [1] : vector<8x512xf32> to vector<8xf32>
    %78 = vector.shape_cast %77 : vector<8xf32> to vector<8x1xf32>
    %cst_50 = arith.constant 5.120000e+02 : f32
    %79 = vector.broadcast %cst_50 : f32 to vector<8x1xf32>
    %80 = arith.divf %78, %79 : vector<8x1xf32>
    %81 = vector.broadcast %73 : vector<8x1xf32> to vector<8x512xf32>
    %82 = arith.subf %69, %81 : vector<8x512xf32>
    %cst_51 = arith.constant 9.99999974E-6 : f32
    %83 = vector.broadcast %cst_51 : f32 to vector<8x1xf32>
    %84 = arith.addf %80, %83 : vector<8x1xf32>
    %85 = math.rsqrt %84 : vector<8x1xf32>
    %86 = vector.broadcast %85 : vector<8x1xf32> to vector<8x512xf32>
    %87 = arith.mulf %82, %86 : vector<8x512xf32>
    %c0_52 = arith.constant 0 : index
    %c0_53 = arith.constant 0 : index
    %88 = vector.load %arg4[%c0_52, %c0_53] : memref<8x1xf32, #tpu.memory_space<vmem>>, vector<8x1xf32>
    %89 = vector.broadcast %88 : vector<8x1xf32> to vector<8x512xf32>
    %90 = arith.mulf %87, %89 : vector<8x512xf32>
    %c0_54 = arith.constant 0 : index
    %c0_55 = arith.constant 0 : index
    %91 = vector.load %arg5[%c0_54, %c0_55] : memref<8x1xf32, #tpu.memory_space<vmem>>, vector<8x1xf32>
    %92 = vector.broadcast %91 : vector<8x1xf32> to vector<8x512xf32>
    %93 = arith.addf %90, %92 : vector<8x512xf32>
    %cst_56 = arith.constant 0.000000e+00 : f32
    %94 = vector.broadcast %cst_56 : f32 to vector<8x512xf32>
    %95 = arith.maximumf %93, %94 : vector<8x512xf32>
    %c17_i32_57 = arith.constant 17 : i32
    %96 = tpu.dynamic_rotate %95 by %c17_i32_57 dim 1 : vector<8x512xf32>, i32 -> vector<8x512xf32>
    %c0_58 = arith.constant 0 : index
    %c0_59 = arith.constant 0 : index
    %97 = vector.load %arg2[%c0_58, %c0_59] : memref<9x512xf32, #tpu.memory_space<vmem>>, vector<1x512xf32>
    %98 = vector.broadcast %97 : vector<1x512xf32> to vector<8x512xf32>
    %99 = arith.mulf %96, %98 : vector<8x512xf32>
    %c0_60 = arith.constant 0 : index
    %c0_61 = arith.constant 0 : index
    %c0_62 = arith.constant 0 : index
    %100 = vector.load %arg6[%c0_60, %c0_61, %c0_62] : memref<9x8x8xf32, #tpu.memory_space<vmem>>, vector<1x8x8xf32>
    %101 = vector.shape_cast %100 : vector<1x8x8xf32> to vector<8x8xf32>
    %cst_63 = arith.constant dense<0.000000e+00> : vector<8x512xf32>
    %102 = tpu.matmul %101, %99, %cst_63 {dimension_numbers = #tpu.dot_dimension_numbers<[1], [0], [0], [1], [0, 0, 1, 1], [], []>} : vector<8x8xf32>, vector<8x512xf32>, vector<8x512xf32> -> vector<8x512xf32>
    %c16_i32_64 = arith.constant 16 : i32
    %103 = tpu.dynamic_rotate %95 by %c16_i32_64 dim 1 : vector<8x512xf32>, i32 -> vector<8x512xf32>
    %c1_65 = arith.constant 1 : index
    %c0_66 = arith.constant 0 : index
    %104 = vector.load %arg2[%c1_65, %c0_66] : memref<9x512xf32, #tpu.memory_space<vmem>>, vector<1x512xf32>
    %105 = vector.broadcast %104 : vector<1x512xf32> to vector<8x512xf32>
    %106 = arith.mulf %103, %105 : vector<8x512xf32>
    %c1_67 = arith.constant 1 : index
    %c0_68 = arith.constant 0 : index
    %c0_69 = arith.constant 0 : index
    %107 = vector.load %arg6[%c1_67, %c0_68, %c0_69] : memref<9x8x8xf32, #tpu.memory_space<vmem>>, vector<1x8x8xf32>
    %108 = vector.shape_cast %107 : vector<1x8x8xf32> to vector<8x8xf32>
    %cst_70 = arith.constant dense<0.000000e+00> : vector<8x512xf32>
    %109 = tpu.matmul %108, %106, %cst_70 {dimension_numbers = #tpu.dot_dimension_numbers<[1], [0], [0], [1], [0, 0, 1, 1], [], []>} : vector<8x8xf32>, vector<8x512xf32>, vector<8x512xf32> -> vector<8x512xf32>
    %110 = arith.addf %102, %109 : vector<8x512xf32>
    %c15_i32_71 = arith.constant 15 : i32
    %111 = tpu.dynamic_rotate %95 by %c15_i32_71 dim 1 : vector<8x512xf32>, i32 -> vector<8x512xf32>
    %c2_72 = arith.constant 2 : index
    %c0_73 = arith.constant 0 : index
    %112 = vector.load %arg2[%c2_72, %c0_73] : memref<9x512xf32, #tpu.memory_space<vmem>>, vector<1x512xf32>
    %113 = vector.broadcast %112 : vector<1x512xf32> to vector<8x512xf32>
    %114 = arith.mulf %111, %113 : vector<8x512xf32>
    %c2_74 = arith.constant 2 : index
    %c0_75 = arith.constant 0 : index
    %c0_76 = arith.constant 0 : index
    %115 = vector.load %arg6[%c2_74, %c0_75, %c0_76] : memref<9x8x8xf32, #tpu.memory_space<vmem>>, vector<1x8x8xf32>
    %116 = vector.shape_cast %115 : vector<1x8x8xf32> to vector<8x8xf32>
    %cst_77 = arith.constant dense<0.000000e+00> : vector<8x512xf32>
    %117 = tpu.matmul %116, %114, %cst_77 {dimension_numbers = #tpu.dot_dimension_numbers<[1], [0], [0], [1], [0, 0, 1, 1], [], []>} : vector<8x8xf32>, vector<8x512xf32>, vector<8x512xf32> -> vector<8x512xf32>
    %118 = arith.addf %110, %117 : vector<8x512xf32>
    %c1_i32_78 = arith.constant 1 : i32
    %119 = tpu.dynamic_rotate %95 by %c1_i32_78 dim 1 : vector<8x512xf32>, i32 -> vector<8x512xf32>
    %c3_79 = arith.constant 3 : index
    %c0_80 = arith.constant 0 : index
    %120 = vector.load %arg2[%c3_79, %c0_80] : memref<9x512xf32, #tpu.memory_space<vmem>>, vector<1x512xf32>
    %121 = vector.broadcast %120 : vector<1x512xf32> to vector<8x512xf32>
    %122 = arith.mulf %119, %121 : vector<8x512xf32>
    %c3_81 = arith.constant 3 : index
    %c0_82 = arith.constant 0 : index
    %c0_83 = arith.constant 0 : index
    %123 = vector.load %arg6[%c3_81, %c0_82, %c0_83] : memref<9x8x8xf32, #tpu.memory_space<vmem>>, vector<1x8x8xf32>
    %124 = vector.shape_cast %123 : vector<1x8x8xf32> to vector<8x8xf32>
    %cst_84 = arith.constant dense<0.000000e+00> : vector<8x512xf32>
    %125 = tpu.matmul %124, %122, %cst_84 {dimension_numbers = #tpu.dot_dimension_numbers<[1], [0], [0], [1], [0, 0, 1, 1], [], []>} : vector<8x8xf32>, vector<8x512xf32>, vector<8x512xf32> -> vector<8x512xf32>
    %126 = arith.addf %118, %125 : vector<8x512xf32>
    %c4_85 = arith.constant 4 : index
    %c0_86 = arith.constant 0 : index
    %c0_87 = arith.constant 0 : index
    %127 = vector.load %arg6[%c4_85, %c0_86, %c0_87] : memref<9x8x8xf32, #tpu.memory_space<vmem>>, vector<1x8x8xf32>
    %128 = vector.shape_cast %127 : vector<1x8x8xf32> to vector<8x8xf32>
    %cst_88 = arith.constant dense<0.000000e+00> : vector<8x512xf32>
    %129 = tpu.matmul %128, %95, %cst_88 {dimension_numbers = #tpu.dot_dimension_numbers<[1], [0], [0], [1], [0, 0, 1, 1], [], []>} : vector<8x8xf32>, vector<8x512xf32>, vector<8x512xf32> -> vector<8x512xf32>
    %130 = arith.addf %126, %129 : vector<8x512xf32>
    %c511_i32_89 = arith.constant 511 : i32
    %131 = tpu.dynamic_rotate %95 by %c511_i32_89 dim 1 : vector<8x512xf32>, i32 -> vector<8x512xf32>
    %c5_90 = arith.constant 5 : index
    %c0_91 = arith.constant 0 : index
    %132 = vector.load %arg2[%c5_90, %c0_91] : memref<9x512xf32, #tpu.memory_space<vmem>>, vector<1x512xf32>
    %133 = vector.broadcast %132 : vector<1x512xf32> to vector<8x512xf32>
    %134 = arith.mulf %131, %133 : vector<8x512xf32>
    %c5_92 = arith.constant 5 : index
    %c0_93 = arith.constant 0 : index
    %c0_94 = arith.constant 0 : index
    %135 = vector.load %arg6[%c5_92, %c0_93, %c0_94] : memref<9x8x8xf32, #tpu.memory_space<vmem>>, vector<1x8x8xf32>
    %136 = vector.shape_cast %135 : vector<1x8x8xf32> to vector<8x8xf32>
    %cst_95 = arith.constant dense<0.000000e+00> : vector<8x512xf32>
    %137 = tpu.matmul %136, %134, %cst_95 {dimension_numbers = #tpu.dot_dimension_numbers<[1], [0], [0], [1], [0, 0, 1, 1], [], []>} : vector<8x8xf32>, vector<8x512xf32>, vector<8x512xf32> -> vector<8x512xf32>
    %138 = arith.addf %130, %137 : vector<8x512xf32>
    %c497_i32_96 = arith.constant 497 : i32
    %139 = tpu.dynamic_rotate %95 by %c497_i32_96 dim 1 : vector<8x512xf32>, i32 -> vector<8x512xf32>
    %c6_97 = arith.constant 6 : index
    %c0_98 = arith.constant 0 : index
    %140 = vector.load %arg2[%c6_97, %c0_98] : memref<9x512xf32, #tpu.memory_space<vmem>>, vector<1x512xf32>
    %141 = vector.broadcast %140 : vector<1x512xf32> to vector<8x512xf32>
    %142 = arith.mulf %139, %141 : vector<8x512xf32>
    %c6_99 = arith.constant 6 : index
    %c0_100 = arith.constant 0 : index
    %c0_101 = arith.constant 0 : index
    %143 = vector.load %arg6[%c6_99, %c0_100, %c0_101] : memref<9x8x8xf32, #tpu.memory_space<vmem>>, vector<1x8x8xf32>
    %144 = vector.shape_cast %143 : vector<1x8x8xf32> to vector<8x8xf32>
    %cst_102 = arith.constant dense<0.000000e+00> : vector<8x512xf32>
    %145 = tpu.matmul %144, %142, %cst_102 {dimension_numbers = #tpu.dot_dimension_numbers<[1], [0], [0], [1], [0, 0, 1, 1], [], []>} : vector<8x8xf32>, vector<8x512xf32>, vector<8x512xf32> -> vector<8x512xf32>
    %146 = arith.addf %138, %145 : vector<8x512xf32>
    %c496_i32_103 = arith.constant 496 : i32
    %147 = tpu.dynamic_rotate %95 by %c496_i32_103 dim 1 : vector<8x512xf32>, i32 -> vector<8x512xf32>
    %c7_104 = arith.constant 7 : index
    %c0_105 = arith.constant 0 : index
    %148 = vector.load %arg2[%c7_104, %c0_105] : memref<9x512xf32, #tpu.memory_space<vmem>>, vector<1x512xf32>
    %149 = vector.broadcast %148 : vector<1x512xf32> to vector<8x512xf32>
    %150 = arith.mulf %147, %149 : vector<8x512xf32>
    %c7_106 = arith.constant 7 : index
    %c0_107 = arith.constant 0 : index
    %c0_108 = arith.constant 0 : index
    %151 = vector.load %arg6[%c7_106, %c0_107, %c0_108] : memref<9x8x8xf32, #tpu.memory_space<vmem>>, vector<1x8x8xf32>
    %152 = vector.shape_cast %151 : vector<1x8x8xf32> to vector<8x8xf32>
    %cst_109 = arith.constant dense<0.000000e+00> : vector<8x512xf32>
    %153 = tpu.matmul %152, %150, %cst_109 {dimension_numbers = #tpu.dot_dimension_numbers<[1], [0], [0], [1], [0, 0, 1, 1], [], []>} : vector<8x8xf32>, vector<8x512xf32>, vector<8x512xf32> -> vector<8x512xf32>
    %154 = arith.addf %146, %153 : vector<8x512xf32>
    %c495_i32_110 = arith.constant 495 : i32
    %155 = tpu.dynamic_rotate %95 by %c495_i32_110 dim 1 : vector<8x512xf32>, i32 -> vector<8x512xf32>
    %c8_111 = arith.constant 8 : index
    %c0_112 = arith.constant 0 : index
    %156 = vector.load %arg2[%c8_111, %c0_112] : memref<9x512xf32, #tpu.memory_space<vmem>>, vector<1x512xf32>
    %157 = vector.broadcast %156 : vector<1x512xf32> to vector<8x512xf32>
    %158 = arith.mulf %155, %157 : vector<8x512xf32>
    %c8_113 = arith.constant 8 : index
    %c0_114 = arith.constant 0 : index
    %c0_115 = arith.constant 0 : index
    %159 = vector.load %arg6[%c8_113, %c0_114, %c0_115] : memref<9x8x8xf32, #tpu.memory_space<vmem>>, vector<1x8x8xf32>
    %160 = vector.shape_cast %159 : vector<1x8x8xf32> to vector<8x8xf32>
    %cst_116 = arith.constant dense<0.000000e+00> : vector<8x512xf32>
    %161 = tpu.matmul %160, %158, %cst_116 {dimension_numbers = #tpu.dot_dimension_numbers<[1], [0], [0], [1], [0, 0, 1, 1], [], []>} : vector<8x8xf32>, vector<8x512xf32>, vector<8x512xf32> -> vector<8x512xf32>
    %162 = arith.addf %154, %161 : vector<8x512xf32>
    %cst_117 = arith.constant dense<0.000000e+00> : vector<8xf32>
    %163 = vector.multi_reduction <add>, %162, %cst_117 [1] : vector<8x512xf32> to vector<8xf32>
    %164 = vector.shape_cast %163 : vector<8xf32> to vector<8x1xf32>
    %cst_118 = arith.constant 5.120000e+02 : f32
    %165 = vector.broadcast %cst_118 : f32 to vector<8x1xf32>
    %166 = arith.divf %164, %165 : vector<8x1xf32>
    %167 = vector.broadcast %166 : vector<8x1xf32> to vector<8x512xf32>
    %168 = arith.subf %162, %167 : vector<8x512xf32>
    %169 = arith.mulf %168, %168 : vector<8x512xf32>
    %cst_119 = arith.constant dense<0.000000e+00> : vector<8xf32>
    %170 = vector.multi_reduction <add>, %169, %cst_119 [1] : vector<8x512xf32> to vector<8xf32>
    %171 = vector.shape_cast %170 : vector<8xf32> to vector<8x1xf32>
    %cst_120 = arith.constant 5.120000e+02 : f32
    %172 = vector.broadcast %cst_120 : f32 to vector<8x1xf32>
    %173 = arith.divf %171, %172 : vector<8x1xf32>
    %174 = vector.broadcast %166 : vector<8x1xf32> to vector<8x512xf32>
    %175 = arith.subf %162, %174 : vector<8x512xf32>
    %cst_121 = arith.constant 9.99999974E-6 : f32
    %176 = vector.broadcast %cst_121 : f32 to vector<8x1xf32>
    %177 = arith.addf %173, %176 : vector<8x1xf32>
    %178 = math.rsqrt %177 : vector<8x1xf32>
    %179 = vector.broadcast %178 : vector<8x1xf32> to vector<8x512xf32>
    %180 = arith.mulf %175, %179 : vector<8x512xf32>
    %c0_122 = arith.constant 0 : index
    %c0_123 = arith.constant 0 : index
    %181 = vector.load %arg7[%c0_122, %c0_123] : memref<8x1xf32, #tpu.memory_space<vmem>>, vector<8x1xf32>
    %182 = vector.broadcast %181 : vector<8x1xf32> to vector<8x512xf32>
    %183 = arith.mulf %180, %182 : vector<8x512xf32>
    %c0_124 = arith.constant 0 : index
    %c0_125 = arith.constant 0 : index
    %184 = vector.load %arg8[%c0_124, %c0_125] : memref<8x1xf32, #tpu.memory_space<vmem>>, vector<8x1xf32>
    %185 = vector.broadcast %184 : vector<8x1xf32> to vector<8x512xf32>
    %186 = arith.addf %183, %185 : vector<8x512xf32>
    %cst_126 = arith.constant 0.000000e+00 : f32
    %187 = vector.broadcast %cst_126 : f32 to vector<8x512xf32>
    %188 = arith.maximumf %186, %187 : vector<8x512xf32>
    %c0_127 = arith.constant 0 : index
    %c0_128 = arith.constant 0 : index
    %189 = vector.load %arg9[%c0_127, %c0_128] : memref<8x512xf32, #tpu.memory_space<vmem>>, vector<8x512xf32>
    tpu.vector_store %arg9[%c0_127, %c0_128], %188 {strides = array<i32>} : memref<8x512xf32, #tpu.memory_space<vmem>>, vector<8x512xf32>,
    return
  }
}

</mosaic_0001>

<bundles_post_ra>
// kernel: up_forward.1
= control target key start
LH: loop header
LB: loop body
LE: loop exit
PB: predicated region body
PF: predicated region fallthrough
CT: control target
= control target key end

     0   :  { %v4516_v3 = vmov 0.0   ;;  %s3574_s13 = smov 17   ;;  %s3577_s14 = smov 1   ;;  %vm323_vm2 = vcmask 64512   ;;  %s4506_s1 = inlined_call_operand.vmem [shape: f32[128,512], index: 1, kind: input, shape index: {}]   ;;  %s4507_s0 = inlined_call_operand.vmem [shape: f32[8,128], index: 0, kind: input, shape index: {}]   ;;  %s4508_s2 = inlined_call_operand.vmem [shape: f32[9,512], index: 2, kind: input, shape index: {}]   ;;  %s4509_s3 = inlined_call_operand.vmem [shape: f32[9,8,8], index: 3, kind: input, shape index: {}]   ;;  %s4510_s4 = inlined_call_operand.vmem [shape: f32[8,1], index: 4, kind: input, shape index: {}]   ;;  %s4511_s5 = inlined_call_operand.vmem [shape: f32[8,1], index: 5, kind: input, shape index: {}]   ;;  %s4512_s6 = inlined_call_operand.vmem [shape: f32[9,8,8], index: 6, kind: input, shape index: {}]   ;;  %s4513_s7 = inlined_call_operand.vmem [shape: f32[8,1], index: 7, kind: input, shape index: {}]   ;;  %s4514_s8 = inlined_call_operand.vmem [shape: f32[8,1], index: 8, kind: input, shape index: {}]   ;;  %s4515_s9 = inlined_call_operand.vmem [shape: f32[8,512], index: 9, kind: output, shape index: {}]  }
   0x1   :  { %v94_v0 = vld [vmem:[%s4506_s1 + $0x1e8] sm:$0xff]  ;;  %v93_v1 = vld [vmem:[%s4506_s1 + $0x1e0] sm:$0xff]  ;;  %161 = vmatprep.mubr.f32.mxu0 %v4516_v3  ;;  %232 = vmatprep.mubr.f32.mxu1 %v4516_v3  ;;  %v96_v5 = vld [vmem:[%s4506_s1 + $0x1f8] sm:$0xff]  ;;  %s3578_s15 = smov 127   ;;  %s3579_s16 = smov 113  }
   0x2   :  { %v90_v2 = vld [vmem:[%s4506_s1 + $0x1c8] sm:$0xff]  ;;  %97 = vmatprep.subr.mxu0 %v94_v0  ;;  %v89_v4 = vld [vmem:[%s4506_s1 + $0x1c0] sm:$0xff]  ;;  %168 = vmatprep.subr.mxu1 %v96_v5  ;;  %v95_v7 = vld [vmem:[%s4506_s1 + $0x1f0] sm:$0xff]  ;;  %s3580_s17 = smov 112   ;;  %s3581_s18 = smov 111  }
   0x3   :  { %98 = vmatpush1.msra.mxu0 %v93_v1  ;;  %v86_v6 = vld [vmem:[%s4506_s1 + $0x1a8] sm:$0xff]  ;;  %v85_v8 = vld [vmem:[%s4506_s1 + $0x1a0] sm:$0xff]  ;;  %169 = vmatpush1.msra.mxu1 %v95_v7  ;;  %v92_v9 = vld [vmem:[%s4506_s1 + $0x1d8] sm:$0xff] }
   0x4   :  { %99 = vmatprep.subr.mxu0 %v90_v2  ;;  %v91_v10 = vld [vmem:[%s4506_s1 + $0x1d0] sm:$0xff]  ;;  %v82_v11 = vld [vmem:[%s4506_s1 + $0x188] sm:$0xff]  ;;  %170 = vmatprep.subr.mxu1 %v92_v9  ;;  %v88_v12 = vld [vmem:[%s4506_s1 + $0x1b8] sm:$0xff]  ;;  %v247_v9 = vlaneseq }
   0x5   :  { %100 = vmatpush1.msra.mxu0 %v89_v4  ;;  %v81_v13 = vld [vmem:[%s4506_s1 + $0x180] sm:$0xff]  ;;  %171 = vmatpush1.msra.mxu1 %v91_v10  ;;  %v87_v14 = vld [vmem:[%s4506_s1 + $0x1b0] sm:$0xff]  ;;  %v84_v15 = vld [vmem:[%s4506_s1 + $0x198] sm:$0xff] }
   0x6   :  { %101 = vmatprep.subr.mxu0 %v86_v6  ;;  %v78_v16 = vld [vmem:[%s4506_s1 + $0x168] sm:$0xff]  ;;  %172 = vmatprep.subr.mxu1 %v88_v12  ;;  %v83_v17 = vld [vmem:[%s4506_s1 + $0x190] sm:$0xff]  ;;  %v77_v18 = vld [vmem:[%s4506_s1 + $0x160] sm:$0xff]  ;;  %v257_v12 = vshrl.u32 %v247_v9, 7 }
   0x7   :  { %102 = vmatpush1.msra.mxu0 %v85_v8  ;;  %173 = vmatpush1.msra.mxu1 %v87_v14  ;;  %v80_v19 = vld [vmem:[%s4506_s1 + $0x178] sm:$0xff]  ;;  %v74_v20 = vld [vmem:[%s4506_s1 + $0x148] sm:$0xff]  ;;  %v79_v21 = vld [vmem:[%s4506_s1 + $0x170] sm:$0xff] }
   0x8   :  { %103 = vmatprep.subr.mxu0 %v82_v11  ;;  %174 = vmatprep.subr.mxu1 %v84_v15  ;;  %v73_v22 = vld [vmem:[%s4506_s1 + $0x140] sm:$0xff]  ;;  %v76_v23 = vld [vmem:[%s4506_s1 + $0x158] sm:$0xff]  ;;  %v70_v24 = vld [vmem:[%s4506_s1 + $0x128] sm:$0xff]  ;;  %v3908_v15 = vand.u32 127, %v247_v9 }
   0x9   :  { %104 = vmatpush1.msra.mxu0 %v81_v13  ;;  %175 = vmatpush1.msra.mxu1 %v83_v17  ;;  %v75_v25 = vld [vmem:[%s4506_s1 + $0x150] sm:$0xff]  ;;  %v69_v26 = vld [vmem:[%s4506_s1 + $0x120] sm:$0xff]  ;;  %v72_v27 = vld [vmem:[%s4506_s1 + $0x138] sm:$0xff] }
   0xa   :  { %105 = vmatprep.subr.mxu0 %v78_v16  ;;  %176 = vmatprep.subr.mxu1 %v80_v19  ;;  %v66_v28 = vld [vmem:[%s4506_s1 + $0x108] sm:$0xff]  ;;  %v71_v29 = vld [vmem:[%s4506_s1 + $0x130] sm:$0xff]  ;;  %v65_v30 = vld [vmem:[%s4506_s1 + $0x100] sm:$0xff]  ;;  %v3910_v16 = vsub.s32 1, %v257_v12  ;;  %vm289_vm0 = vcmp.lt.s32.totalorder %v3908_v15, 16  ;;  %vm249_vm1 = vcmp.lt.s32.totalorder %v3908_v15, 17 }
   0xb   :  { %106 = vmatpush1.msra.mxu0 %v77_v18  ;;  %177 = vmatpush1.msra.mxu1 %v79_v21  ;;  %v68_v31 = vld [vmem:[%s4506_s1 + $0x118] sm:$0xff]  ;;  %v62_v32 = vld [vmem:[%s4506_s1 + $0xe8] sm:$0xff]  ;;  %v67_v33 = vld [vmem:[%s4506_s1 + $0x110] sm:$0xff]  ;;  %vm622_vm3 = vcmp.lt.s32.totalorder %v3908_v15, 15  ;;  %vm813_vm4 = vcmp.lt.s32.totalorder %v3908_v15, 1  ;;  %vm1155_vm5 = vcmp.lt.s32.totalorder %v3908_v15, 127 }
   0xc   :  { %107 = vmatprep.subr.mxu0 %v74_v20  ;;  %178 = vmatprep.subr.mxu1 %v76_v23  ;;  %v61_v34 = vld [vmem:[%s4506_s1 + $0xe0] sm:$0xff]  ;;  %v64_v35 = vld [vmem:[%s4506_s1 + $0xf8] sm:$0xff]  ;;  %v58_v36 = vld [vmem:[%s4506_s1 + $0xc8] sm:$0xff]  ;;  %vm1346_vm6 = vcmp.lt.s32.totalorder %v3908_v15, 113  ;;  %vm1537_vm7 = vcmp.lt.s32.totalorder %v3908_v15, 112  ;;  %vm1728_vm8 = vcmp.lt.s32.totalorder %v3908_v15, 111 }
   0xd   :  { %108 = vmatpush1.msra.mxu0 %v73_v22  ;;  %179 = vmatpush1.msra.mxu1 %v75_v25  ;;  %v63_v37 = vld [vmem:[%s4506_s1 + $0xf0] sm:$0xff]  ;;  %v57_v38 = vld [vmem:[%s4506_s1 + $0xc0] sm:$0xff]  ;;  %v60_v39 = vld [vmem:[%s4506_s1 + $0xd8] sm:$0xff]  ;;  %v3928_v25 = vsub.s32 0, %v257_v12 }
   0xe   :  { %109 = vmatprep.subr.mxu0 %v70_v24  ;;  %180 = vmatprep.subr.mxu1 %v72_v27  ;;  %v54_v40 = vld [vmem:[%s4506_s1 + $0xa8] sm:$0xff]  ;;  %v59_v41 = vld [vmem:[%s4506_s1 + $0xd0] sm:$0xff]  ;;  %v53_v42 = vld [vmem:[%s4506_s1 + $0xa0] sm:$0xff]  ;;  %v3932_v27 = vsub.s32 2, %v257_v12 }
   0xf   :  { %110 = vmatpush1.msra.mxu0 %v69_v26  ;;  %181 = vmatpush1.msra.mxu1 %v71_v29  ;;  %v56_v43 = vld [vmem:[%s4506_s1 + $0xb8] sm:$0xff]  ;;  %v50_v44 = vld [vmem:[%s4506_s1 + $0x88] sm:$0xff]  ;;  %v55_v45 = vld [vmem:[%s4506_s1 + $0xb0] sm:$0xff]  ;;  %v3930_v26 = vsub.s32 3, %v257_v12 }
  0x10   :  { %111 = vmatprep.subr.mxu0 %v66_v28  ;;  %182 = vmatprep.subr.mxu1 %v68_v31  ;;  %v49_v46 = vld [vmem:[%s4506_s1 + $0x80] sm:$0xff]  ;;  %v52_v47 = vld [vmem:[%s4506_s1 + $0x98] sm:$0xff]  ;;  %v46_v48 = vld [vmem:[%s4506_s1 + $0x68] sm:$0xff] }
  0x11   :  { %112 = vmatpush1.msra.mxu0 %v65_v30  ;;  %183 = vmatpush1.msra.mxu1 %v67_v33  ;;  %v51_v49 = vld [vmem:[%s4506_s1 + $0x90] sm:$0xff]  ;;  %v45_v50 = vld [vmem:[%s4506_s1 + $0x60] sm:$0xff]  ;;  %v48_v51 = vld [vmem:[%s4506_s1 + $0x78] sm:$0xff] }
  0x12   :  { %113 = vmatprep.subr.mxu0 %v62_v32  ;;  %184 = vmatprep.subr.mxu1 %v64_v35  ;;  %v42_v52 = vld [vmem:[%s4506_s1 + $0x48] sm:$0xff]  ;;  %v47_v53 = vld [vmem:[%s4506_s1 + $0x70] sm:$0xff]  ;;  %v41_v54 = vld [vmem:[%s4506_s1 + $0x40] sm:$0xff] }
  0x13   :  { %114 = vmatpush1.msra.mxu0 %v61_v34  ;;  %185 = vmatpush1.msra.mxu1 %v63_v37  ;;  %v44_v55 = vld [vmem:[%s4506_s1 + $0x58] sm:$0xff]  ;;  %v38_v56 = vld [vmem:[%s4506_s1 + $0x28] sm:$0xff]  ;;  %v43_v57 = vld [vmem:[%s4506_s1 + $0x50] sm:$0xff] }
  0x14   :  { %115 = vmatprep.subr.mxu0 %v58_v36  ;;  %186 = vmatprep.subr.mxu1 %v60_v39  ;;  %v37_v58 = vld [vmem:[%s4506_s1 + $0x20] sm:$0xff]  ;;  %v40_v59 = vld [vmem:[%s4506_s1 + $0x38] sm:$0xff]  ;;  %v34_v60 = vld [vmem:[%s4506_s1 + $0x8] sm:$0xff] }
  0x15   :  { %116 = vmatpush1.msra.mxu0 %v57_v38  ;;  %187 = vmatpush1.msra.mxu1 %v59_v41  ;;  %v39_v61 = vld [vmem:[%s4506_s1 + $0x30] sm:$0xff]  ;;  %v33_v62 = vld [vmem:[%s4506_s1] sm:$0xff]  ;;  %v36_v63 = vld [vmem:[%s4506_s1 + $0x18] sm:$0xff] }
  0x16   :  { %117 = vmatprep.subr.mxu0 %v54_v40  ;;  %188 = vmatprep.subr.mxu1 %v56_v43  ;;  %v32_v0 = vld [vmem:[%s4507_s0] sm:$0xff]  ;;  %v35_v1 = vld [vmem:[%s4506_s1 + $0x10] sm:$0xff]  ;;  %s3575_s0 = smov 16   ;;  %s3576_s1 = smov 15  }
  0x17   :  { %118 = vmatpush1.msra.mxu0 %v53_v42  ;;  %189 = vmatpush1.msra.mxu1 %v55_v45  ;;  %v3498_v17 = vld [vmem:[%s4508_s2 + $0x1] ss:$8 sm:$0xf]  ;;  %v254_v28 = vld [vmem:[%s4508_s2] ss:$8 sm:$0xf] }
  0x18   :  { %119 = vmatprep.subr.mxu0 %v50_v44  ;;  %190 = vmatprep.subr.mxu1 %v52_v47  ;;  %v3921_v20 = vrot.slane %v3498_v17, %v3910_v16  ;;  %v3942_v31 = vrot.slane %v3498_v17, %v3928_v25  ;;  %v3945_v32 = vrot.slane %v3498_v17, %v3930_v26  ;;  %v3504_v43 = vld [vmem:[%s4508_s2 + $0x2] ss:$8 sm:$0xf] }
  0x19   :  { %120 = vmatpush1.msra.mxu0 %v49_v46  ;;  %191 = vmatpush1.msra.mxu1 %v51_v49  ;;  %v3949_v33 = vrot.slane %v254_v28, %v3910_v16  ;;  %v3952_v34 = vrot.slane %v3498_v17, %v3932_v27  ;;  %v3957_v38 = vrot.slane %v254_v28, %v3928_v25  ;;  %v3499_v47 = vld [vmem:[%s4509_s3 + $0x8] sm:$0xff] }
  0x1a   :  { %121 = vmatprep.subr.mxu0 %v46_v48  ;;  %192 = vmatprep.subr.mxu1 %v48_v51  ;;  %v3966_v42 = vrot.slane %v254_v28, %v3930_v26  ;;  %v3979_v49 = vrot.slane %v254_v28, %v3932_v27 }
  0x1b   :  { %122 = vmatpush1.msra.mxu0 %v45_v50  ;;  %193 = vmatpush1.msra.mxu1 %v47_v53  ;;  %v3987_v53 = vrot.slane %v3504_v43, %v3932_v27 }
  0x1c   :  { %123 = vmatprep.subr.mxu0 %v42_v52  ;;  %194 = vmatprep.subr.mxu1 %v44_v55  ;;  %v3984_v52 = vrot.slane %v3504_v43, %v3910_v16 }
  0x1d   :  { %124 = vmatpush1.msra.mxu0 %v41_v54  ;;  %195 = vmatpush1.msra.mxu1 %v43_v57  ;;  %v3990_v54 = vrot.slane %v3504_v43, %v3928_v25 }
  0x1e   :  { %125 = vmatprep.subr.mxu0 %v38_v56  ;;  %196 = vmatprep.subr.mxu1 %v40_v59 }
  0x1f   :  { %126 = vmatpush1.msra.mxu0 %v37_v58  ;;  %197 = vmatpush1.msra.mxu1 %v39_v61  ;;  %v3508_v58 = vld [vmem:[%s4508_s2 + $0x3] ss:$8 sm:$0xf]  ;;  %v4007_v61 = vrot.slane %v3504_v43, %v3930_v26 }
  0x20   :  { %127 = vmatprep.subr.mxu0 %v34_v60  ;;  %198 = vmatprep.subr.mxu1 %v36_v63 }
  0x21   :  { %128 = vmatpush1.msra.mxu0 %v33_v62  ;;  %199 = vmatpush1.msra.mxu1 %v35_v1  ;;  %v280_v62 = vld [vmem:[%s4509_s3] sm:$0xff] }
  0x22   :  { %162 = vmatmul.mubr.f32.vlgmr.msra.gmra.mxu0 %v32_v0  ;;  %233 = vmatmul.mubr.f32.vlgmr.msra.gmra.mxu1 %v32_v0 }
  0x23   :  { %391 = vmatprep.mubr.f32.mxu0 %v4516_v3  ;;  %462 = vmatprep.mubr.f32.mxu1 %v4516_v3 }
  0xe2   :  { %v3832_v2 = vpop.f32.mrf.mxu0  ;;  %v3838_v4 = vpop.f32.mrf.mxu1 }
  0xe3   :  { %239 = vrot.lane.b32.xlu1 %v3832_v2, %s3574_s13  ;;  %281 = vrot.lane.b32.xlu0 %v3832_v2, %s3575_s0 }
  0xe4   :  { %v3852_v5 = vpop.f32.mrf.mxu0  ;;  %v3862_v6 = vpop.f32.mrf.mxu1 }
  0xe7   :  { %285 = vrot.lane.b32.xlu1 %v3838_v4, %s3575_s0  ;;  %614 = vrot.lane.b32.xlu0 %v3832_v2, %s3576_s1 }
  0xeb   :  { %243 = vrot.lane.b32.xlu1 %v3838_v4, %s3574_s13  ;;  %805 = vrot.lane.b32.xlu0 %v3832_v2, %s3577_s14 }
  0xef   :  { %618 = vrot.lane.b32.xlu1 %v3838_v4, %s3576_s1  ;;  %1147 = vrot.lane.b32.xlu0 %v3832_v2, %s3578_s15 }
  0xf3   :  { %809 = vrot.lane.b32.xlu1 %v3838_v4, %s3577_s14  ;;  %283 = vrot.lane.b32.xlu0 %v3852_v5, %s3575_s0 }
  0xf7   :  { %1151 = vrot.lane.b32.xlu1 %v3838_v4, %s3578_s15  ;;  %1338 = vrot.lane.b32.xlu0 %v3832_v2, %s3579_s16 }
  0xfb   :  { %287 = vrot.lane.b32.xlu1 %v3862_v6, %s3575_s0  ;;  %241 = vrot.lane.b32.xlu0 %v3852_v5, %s3574_s13 }
  0xff   :  { %1342 = vrot.lane.b32.xlu1 %v3838_v4, %s3579_s16  ;;  %245 = vrot.lane.b32.xlu0 %v3862_v6, %s3574_s13 }
 0x103   :  { %616 = vrot.lane.b32.xlu1 %v3852_v5, %s3576_s1  ;;  %620 = vrot.lane.b32.xlu0 %v3862_v6, %s3576_s1 }
 0x107   :  { %807 = vrot.lane.b32.xlu1 %v3852_v5, %s3577_s14  ;;  %1529 = vrot.lane.b32.xlu0 %v3832_v2, %s3580_s17 }
 0x10b   :  { %1533 = vrot.lane.b32.xlu1 %v3838_v4, %s3580_s17  ;;  %811 = vrot.lane.b32.xlu0 %v3862_v6, %s3577_s14 }
 0x10f   :  { %1724 = vrot.lane.b32.xlu1 %v3838_v4, %s3581_s18  ;;  %1149 = vrot.lane.b32.xlu0 %v3852_v5, %s3578_s15 }
 0x113   :  { %1153 = vrot.lane.b32.xlu1 %v3862_v6, %s3578_s15  ;;  %1340 = vrot.lane.b32.xlu0 %v3852_v5, %s3579_s16 }
 0x117   :  { %1344 = vrot.lane.b32.xlu1 %v3862_v6, %s3579_s16  ;;  %1531 = vrot.lane.b32.xlu0 %v3852_v5, %s3580_s17 }
 0x11b   :  { %1535 = vrot.lane.b32.xlu1 %v3862_v6, %s3580_s17  ;;  %1722 = vrot.lane.b32.xlu0 %v3852_v5, %s3581_s18 }
 0x11f   :  { %1726 = vrot.lane.b32.xlu1 %v3862_v6, %s3581_s18  ;;  %1720 = vrot.lane.b32.xlu0 %v3832_v2, %s3581_s18 }
 0x155   :  { %v240_v7 = vpop.permute.xlu1 %239  ;;  %v282_v8 = vpop.permute.xlu0 %281 }
 0x159   :  { %v286_v10 = vpop.permute.xlu1 %285  ;;  %v3904_v11 = vpop.permute.xlu0 %614 }
 0x15d   :  { %v244_v13 = vpop.permute.xlu1 %243  ;;  %v3906_v14 = vpop.permute.xlu0 %805 }
 0x161   :  { %v3915_v18 = vpop.permute.xlu1 %618  ;;  %v3917_v19 = vpop.permute.xlu0 %1147 }
 0x165   :  { %v3923_v21 = vpop.permute.xlu1 %809  ;;  %v284_v22 = vpop.permute.xlu0 %283 }
 0x166   :  { %v292_v23 = vsel %vm289_vm0, %v282_v8, %v284_v22  ;;  %v291_v35 = vsel %vm289_vm0, %v284_v22, %v286_v10 }
 0x167   :  { %v318_v24 = vmul.f32 %v3921_v20, %v292_v23  ;;  %v319_v48 = vmul.f32 %v3952_v34, %v291_v35 }
 0x169   :  { %v3937_v29 = vpop.permute.xlu1 %1151  ;;  %357 = vmatprep.subr.mxu0 %v318_v24  ;;  %v3939_v30 = vpop.permute.xlu0 %1338 }
 0x16d   :  { %v288_v36 = vpop.permute.xlu1 %287  ;;  %v242_v37 = vpop.permute.xlu0 %241 }
 0x16e   :  { %v290_v39 = vsel %vm289_vm0, %v286_v10, %v288_v36  ;;  %v293_v40 = vsel %vm289_vm0, %v288_v36, %v282_v8  ;;  %v252_v41 = vsel %vm249_vm1, %v240_v7, %v242_v37  ;;  %v251_v55 = vsel %vm249_vm1, %v242_v37, %v244_v13 }
 0x16f   :  { %v317_v44 = vmul.f32 %v3942_v31, %v293_v40  ;;  %v320_v45 = vmul.f32 %v3945_v32, %v290_v39  ;;  %v277_v46 = vmul.f32 %v3949_v33, %v252_v41  ;;  %v278_v63 = vmul.f32 %v3979_v49, %v251_v55  ;;  %v3515_v40 = vld [vmem:[%s4508_s2 + $0x5] ss:$8 sm:$0xf] }
 0x170   :  { %v4050_v36 = vrot.slane %v3508_v58, %v3928_v25  ;;  %v4053_v37 = vrot.slane %v3508_v58, %v3930_v26  ;;  %v4056_v39 = vrot.slane %v3508_v58, %v3932_v27  ;;  %v3509_v55 = vld [vmem:[%s4509_s3 + $0x18] sm:$0xff] }
 0x171   :  { %428 = vmatprep.subr.mxu1 %v320_v45  ;;  %v3981_v50 = vpop.permute.xlu1 %1342  ;;  %358 = vmatpush1.msra.mxu0 %v317_v44  ;;  %v246_v51 = vpop.permute.xlu0 %245 }
 0x172   :  { %v250_v56 = vsel %vm249_vm1, %v244_v13, %v246_v51  ;;  %v253_v57 = vsel %vm249_vm1, %v246_v51, %v240_v7  ;;  %3500 = vmatmul.mubr.msk.f32.vlgmr.msra.gmra.mxu0 %vm323_vm2, %v3499_v47  ;;  %429 = vmatpush1.msra.mxu1 %v319_v48  ;;  %v4017_v7 = vrot.slane %v3508_v58, %v3910_v16 }
 0x173   :  { %v276_v59 = vmul.f32 %v3957_v38, %v253_v57  ;;  %v279_v60 = vmul.f32 %v3966_v42, %v250_v56  ;;  %502 = vmatprep.subr.mxu0 %v277_v46  ;;  %3501 = vmatmul.mubr.msk.f32.vlgmr.msra.gmra.mxu1 %vm323_vm2, %v3499_v47  ;;  %v4079_v51 = vrot.slane %v3515_v40, %v3910_v16 }
 0x174   :  { %536 = vmatprep.mubr.f32.mxu0 %v4516_v3  ;;  %607 = vmatprep.mubr.f32.mxu1 %v4516_v3 }
 0x175   :  { %v617_v0 = vpop.permute.xlu1 %616  ;;  %503 = vmatpush1.msra.mxu0 %v276_v59  ;;  %573 = vmatprep.subr.mxu1 %v279_v60  ;;  %v621_v1 = vpop.permute.xlu0 %620 }
 0x176   :  { %v624_v8 = vsel %vm622_vm3, %v617_v0, %v3915_v18  ;;  %v625_v9 = vsel %vm622_vm3, %v3904_v11, %v617_v0  ;;  %v623_v10 = vsel %vm622_vm3, %v3915_v18, %v621_v1  ;;  %v626_v12 = vsel %vm622_vm3, %v621_v1, %v3904_v11  ;;  %3502 = vmatmul.mubr.msk.f32.vlgmr.msra.gmra.mxu0 %vm323_vm2, %v280_v62  ;;  %v3505_v18 = vld [vmem:[%s4509_s3 + $0x10] sm:$0xff] }
 0x177   :  { %v651_v13 = vmul.f32 %v3984_v52, %v625_v9  ;;  %v652_v17 = vmul.f32 %v3987_v53, %v624_v8  ;;  %v650_v22 = vmul.f32 %v3990_v54, %v626_v12  ;;  %v653_v23 = vmul.f32 %v4007_v61, %v623_v10  ;;  %574 = vmatpush1.msra.mxu1 %v278_v63  ;;  %v3523_v9 = vld [vmem:[%s4508_s2 + $0x7] ss:$8 sm:$0xf] }
 0x178   :  { %3503 = vmatmul.mubr.msk.f32.vlgmr.msra.gmra.mxu1 %vm323_vm2, %v280_v62  ;;  %723 = vmatprep.mubr.f32.mxu0 %v4516_v3  ;;  %v4104_v63 = vrot.slane %v3515_v40, %v3930_v26  ;;  %v4114_v8 = vrot.slane %v3515_v40, %v3932_v27 }
 0x179   :  { %v808_v11 = vpop.permute.xlu1 %807  ;;  %689 = vmatprep.subr.mxu0 %v651_v13  ;;  %760 = vmatprep.subr.mxu1 %v653_v23  ;;  %v4041_v24 = vpop.permute.xlu0 %1529 }
 0x17a   :  { %v816_v28 = vsel %vm813_vm4, %v3906_v14, %v808_v11  ;;  %690 = vmatpush1.msra.mxu0 %v650_v22  ;;  %761 = vmatpush1.msra.mxu1 %v652_v17  ;;  %v815_v41 = vsel %vm813_vm4, %v808_v11, %v3923_v21 }
 0x17b   :  { %v842_v35 = vmul.f32 %v4017_v7, %v816_v28  ;;  %794 = vmatprep.mubr.f32.mxu1 %v4516_v3  ;;  %3506 = vmatmul.mubr.msk.f32.vlgmr.msra.gmra.mxu0 %vm323_vm2, %v3505_v18  ;;  %v843_v56 = vmul.f32 %v4056_v39, %v815_v41  ;;  %v3516_v28 = vld [vmem:[%s4509_s3 + $0x28] sm:$0xff] }
 0x17c   :  { %3507 = vmatmul.mubr.msk.f32.vlgmr.msra.gmra.mxu1 %vm323_vm2, %v3505_v18  ;;  %914 = vmatprep.mubr.f32.mxu0 %v4516_v3 }
 0x17d   :  { %v4066_v43 = vpop.permute.xlu1 %1533  ;;  %880 = vmatprep.subr.mxu0 %v842_v35  ;;  %v812_v44 = vpop.permute.xlu0 %811  ;;  %985 = vmatprep.mubr.f32.mxu1 %v4516_v3  ;;  %v3527_v35 = vld [vmem:[%s4508_s2 + $0x20] ss:$8 sm:$0xf] }
 0x17e   :  { %v814_v45 = vsel %vm813_vm4, %v3923_v21, %v812_v44  ;;  %v817_v46 = vsel %vm813_vm4, %v812_v44, %v3906_v14  ;;  %v4086_v21 = vrot.slane %v3515_v40, %v3928_v25  ;;  %v3519_v14 = vld [vmem:[%s4508_s2 + $0x6] ss:$8 sm:$0xf]  ;;  %v4164_v44 = vrot.slane %v3523_v9, %v3928_v25 }
 0x17f   :  { %v841_v47 = vmul.f32 %v4050_v36, %v817_v46  ;;  %v844_v48 = vmul.f32 %v4053_v37, %v814_v45  ;;  %v4108_v0 = vrot.slane %v3519_v14, %v3910_v16  ;;  %v4128_v12 = vrot.slane %v3519_v14, %v3930_v26 }
 0x180   :  { %v4152_v11 = vrot.slane %v3519_v14, %v3932_v27  ;;  %4531 = vst [vmem:[#allocation5_spill] sm:$0xff] %v4164_v44  ;;  %v4167_v46 = vrot.slane %v3523_v9, %v3930_v26 }
 0x181   :  { %v4091_v57 = vpop.permute.xlu1 %1724  ;;  %881 = vmatpush1.msra.mxu0 %v841_v47  ;;  %951 = vmatprep.subr.mxu1 %v844_v48  ;;  %v1150_v58 = vpop.permute.xlu0 %1149  ;;  %4528 = vst [vmem:[#allocation2_spill] sm:$0xff] %v4128_v12 }
 0x182   :  { %v1157_v59 = vsel %vm1155_vm5, %v1150_v58, %v3937_v29  ;;  %v1158_v60 = vsel %vm1155_vm5, %v3917_v19, %v1150_v58  ;;  %3510 = vmatmul.mubr.msk.f32.vlgmr.msra.gmra.mxu0 %vm323_vm2, %v3509_v55  ;;  %952 = vmatpush1.msra.mxu1 %v843_v56  ;;  %4530 = vst [vmem:[#allocation4_spill] sm:$0xff] %v4152_v11  ;;  %4532 = vst [vmem:[#allocation6_spill] sm:$0xff] %v4167_v46 }
 0x183   :  { %v1184_v62 = vmul.f32 %v4079_v51, %v1157_v59  ;;  %1031 = vmatprep.subr.mxu0 %v3852_v5  ;;  %3511 = vmatmul.mubr.msk.f32.vlgmr.msra.gmra.mxu1 %vm323_vm2, %v3509_v55  ;;  %v1183_v1 = vmul.f32 %v4086_v21, %v1158_v60  ;;  %v3512_v5 = vld [vmem:[%s4509_s3 + $0x20] sm:$0xff]  ;;  %v4191_v59 = vrot.slane %v3523_v9, %v3932_v27  ;;  %v3520_v60 = vld [vmem:[%s4509_s3 + $0x30] sm:$0xff] }
 0x184   :  { %1032 = vmatpush1.msra.mxu0 %v3832_v2  ;;  %1102 = vmatprep.subr.mxu1 %v3862_v6  ;;  %v4125_v2 = vrot.slane %v3519_v14, %v3928_v25 }
 0x185   :  { %1103 = vmatpush1.msra.mxu1 %v3838_v4  ;;  %v1154_v10 = vpop.permute.xlu1 %1153  ;;  %1065 = vmatprep.mubr.f32.mxu0 %v4516_v3  ;;  %v1341_v6 = vpop.permute.xlu0 %1340  ;;  %4534 = vst [vmem:[#allocation8_spill] sm:$0xff] %v4191_v59 }
 0x186   :  { %v1156_v13 = vsel %vm1155_vm5, %v3937_v29, %v1154_v10  ;;  %v1159_v17 = vsel %vm1155_vm5, %v1154_v10, %v3917_v19  ;;  %1222 = vmatprep.subr.mxu0 %v1184_v62  ;;  %v1348_v4 = vsel %vm1346_vm6, %v1341_v6, %v3981_v50  ;;  %v1349_v22 = vsel %vm1346_vm6, %v3939_v30, %v1341_v6 }
 0x187   :  { %v1186_v23 = vmul.f32 %v4104_v63, %v1159_v17  ;;  %v1375_v18 = vmul.f32 %v4108_v0, %v1348_v4  ;;  %3513 = vmatmul.mubr.msk.f32.vlgmr.msra.gmra.mxu0 %vm323_vm2, %v3512_v5  ;;  %v4147_v29 = vrot.slane %v3523_v9, %v3910_v16  ;;  %v1185_v19 = vmul.f32 %v4114_v8, %v1156_v13 }
 0x188   :  { %1136 = vmatprep.mubr.f32.mxu1 %v4516_v3  ;;  %1223 = vmatpush1.msra.mxu0 %v1183_v1  ;;  %v1374_v40 = vmul.f32 %v4125_v2, %v1349_v22  ;;  %v4202_v10 = vrot.slane %v3527_v35, %v3928_v25 }
 0x189   :  { %4529 = vst [vmem:[#allocation3_spill] sm:$0xff] %v4147_v29  ;;  %3514 = vmatmul.mubr.msk.f32.vlgmr.msra.gmra.mxu1 %vm323_vm2, %v3512_v5  ;;  %v1345_v41 = vpop.permute.xlu1 %1344  ;;  %1256 = vmatprep.mubr.f32.mxu0 %v4516_v3  ;;  %v1532_v45 = vpop.permute.xlu0 %1531  ;;  %v4199_v5 = vrot.slane %v3527_v35, %v3932_v27 }
 0x18a   :  { %v1347_v47 = vsel %vm1346_vm6, %v3981_v50, %v1345_v41  ;;  %v1350_v48 = vsel %vm1346_vm6, %v1345_v41, %v3939_v30  ;;  %1293 = vmatprep.subr.mxu1 %v1186_v23  ;;  %1413 = vmatprep.subr.mxu0 %v1375_v18  ;;  %v1539_v55 = vsel %vm1537_vm7, %v1532_v45, %v4066_v43 }
 0x18b   :  { %v1377_v56 = vmul.f32 %v4128_v12, %v1350_v48  ;;  %v1540_v14 = vsel %vm1537_vm7, %v4041_v24, %v1532_v45  ;;  %v1566_v50 = vmul.f32 %v4147_v29, %v1539_v55  ;;  %3517 = vmatmul.mubr.msk.f32.vlgmr.msra.gmra.mxu0 %vm323_vm2, %v3516_v28  ;;  %v4186_v30 = vrot.slane %v3527_v35, %v3910_v16 }
 0x18c   :  { %v1376_v58 = vmul.f32 %v4152_v11, %v1347_v47  ;;  %1294 = vmatpush1.msra.mxu1 %v1185_v19  ;;  %1327 = vmatprep.mubr.f32.mxu1 %v4516_v3  ;;  %v1565_v62 = vmul.f32 %v4164_v44, %v1540_v14  ;;  %4535 = vst [vmem:[#allocation9_spill] sm:$0xff] %v4199_v5  ;;  %4536 = vst [vmem:[#allocation10_spill] sm:$0xff] %v4202_v10 }
 0x18d   :  { %4533 = vst [vmem:[#allocation7_spill] sm:$0xff] %v4186_v30  ;;  %1414 = vmatpush1.msra.mxu0 %v1374_v40  ;;  %3518 = vmatmul.mubr.msk.f32.vlgmr.msra.gmra.mxu1 %vm323_vm2, %v3516_v28  ;;  %v1536_v1 = vpop.permute.xlu1 %1535  ;;  %v1723_v16 = vpop.permute.xlu0 %1722 }
 0x18e   :  { %v1538_v9 = vsel %vm1537_vm7, %v4066_v43, %v1536_v1  ;;  %v1541_v6 = vsel %vm1537_vm7, %v1536_v1, %v4041_v24  ;;  %1447 = vmatprep.mubr.f32.mxu0 %v4516_v3  ;;  %1484 = vmatprep.subr.mxu1 %v1377_v56  ;;  %v1730_v13 = vsel %vm1728_vm8, %v1723_v16, %v4091_v57  ;;  %v3524_v24 = vld [vmem:[%s4509_s3 + $0x38] sm:$0xff] }
 0x18f   :  { %v1568_v27 = vmul.f32 %v4167_v46, %v1541_v6  ;;  %1604 = vmatprep.subr.mxu0 %v1566_v50  ;;  %v1757_v25 = vmul.f32 %v4186_v30, %v1730_v13  ;;  %3521 = vmatmul.mubr.msk.f32.vlgmr.msra.gmra.mxu0 %vm323_vm2, %v3520_v60  ;;  %v4218_v43 = vrot.slane %v3527_v35, %v3930_v26 }
 0x190   :  { %v1567_v17 = vmul.f32 %v4191_v59, %v1538_v9  ;;  %1485 = vmatpush1.msra.mxu1 %v1376_v58  ;;  %1518 = vmatprep.mubr.f32.mxu1 %v4516_v3 }
 0x191   :  { %4537 = vst [vmem:[#allocation11_spill] sm:$0xff] %v4218_v43  ;;  %1605 = vmatpush1.msra.mxu0 %v1565_v62  ;;  %3522 = vmatmul.mubr.msk.f32.vlgmr.msra.gmra.mxu1 %vm323_vm2, %v3520_v60  ;;  %v1727_v4 = vpop.permute.xlu1 %1726  ;;  %v1721_v22 = vpop.permute.xlu0 %1720 }
 0x192   :  { %v1729_v23 = vsel %vm1728_vm8, %v4091_v57, %v1727_v4  ;;  %1638 = vmatprep.mubr.f32.mxu0 %v4516_v3  ;;  %1675 = vmatprep.subr.mxu1 %v1568_v27  ;;  %v1731_v26 = vsel %vm1728_vm8, %v1721_v22, %v1723_v16  ;;  %v1732_v18 = vsel %vm1728_vm8, %v1727_v4, %v1721_v22  ;;  %v3528_v57 = vld [vmem:[%s4509_s3 + $0x40] sm:$0xff] }
 0x193   :  { %v1758_v19 = vmul.f32 %v4199_v5, %v1729_v23  ;;  %1795 = vmatprep.subr.mxu0 %v1757_v25  ;;  %v1756_v28 = vmul.f32 %v4202_v10, %v1731_v26  ;;  %v1759_v35 = vmul.f32 %v4218_v43, %v1732_v18  ;;  %3525 = vmatmul.mubr.msk.f32.vlgmr.msra.gmra.mxu0 %vm323_vm2, %v3524_v24 }
 0x194   :  { %1676 = vmatpush1.msra.mxu1 %v1567_v17  ;;  %1709 = vmatprep.mubr.f32.mxu1 %v4516_v3 }
 0x195   :  { %3526 = vmatmul.mubr.msk.f32.vlgmr.msra.gmra.mxu1 %vm323_vm2, %v3524_v24  ;;  %1796 = vmatpush1.msra.mxu0 %v1756_v28 }
 0x196   :  { %1829 = vmatprep.mubr.f32.mxu0 %v4516_v3  ;;  %1866 = vmatprep.subr.mxu1 %v1759_v35 }
 0x197   :  { %3529 = vmatmul.mubr.msk.f32.vlgmr.msra.gmra.mxu0 %vm323_vm2, %v3528_v57  ;;  %1867 = vmatpush1.msra.mxu1 %v1758_v19 }
 0x198   :  { %1900 = vmatprep.mubr.f32.mxu1 %v4516_v3  ;;  %2064 = vmatprep.mubr.f32.mxu0 %v4516_v3 }
 0x199   :  { %3530 = vmatmul.mubr.msk.f32.vlgmr.msra.gmra.mxu1 %vm323_vm2, %v3528_v57 }
 0x19a   :  { %2135 = vmatprep.mubr.f32.mxu1 %v4516_v3 }
 0x232   :  { %v393_v40 = vpop.f32.mrf.mxu0 }
 0x233   :  { %v464_v41 = vpop.f32.mrf.mxu1 }
 0x234   :  { %v395_v45 = vpop.f32.mrf.mxu0 }
 0x235   :  { %v466_v47 = vpop.f32.mrf.mxu1 }
 0x236   :  { %v538_v48 = vpop.f32.mrf.mxu0 }
 0x237   :  { %v539_v4 = vadd.f32 %v538_v48, %v393_v40 }
 0x238   :  { %v609_v55 = vpop.f32.mrf.mxu1  ;;  %v540_v56 = vpop.f32.mrf.mxu0 }
 0x239   :  { %v610_v22 = vadd.f32 %v609_v55, %v464_v41  ;;  %v541_v23 = vadd.f32 %v540_v56, %v395_v45 }
 0x23a   :  { %v611_v14 = vpop.f32.mrf.mxu1 }
 0x23b   :  { %v725_v50 = vpop.f32.mrf.mxu0  ;;  %v612_v19 = vadd.f32 %v611_v14, %v466_v47 }
 0x23c   :  { %v796_v58 = vpop.f32.mrf.mxu1  ;;  %v801_v28 = vadd.f32 %v725_v50, %v539_v4 }
 0x23d   :  { %v727_v60 = vpop.f32.mrf.mxu0  ;;  %v803_v43 = vadd.f32 %v796_v58, %v610_v22 }
 0x23e   :  { %v798_v62 = vpop.f32.mrf.mxu1  ;;  %v802_v35 = vadd.f32 %v727_v60, %v541_v23 }
 0x23f   :  { %v804_v59 = vadd.f32 %v798_v62, %v612_v19 }
 0x242   :  { %v916_v1 = vpop.f32.mrf.mxu0 }
 0x243   :  { %v987_v16 = vpop.f32.mrf.mxu1  ;;  %v992_v5 = vadd.f32 %v916_v1, %v801_v28 }
 0x244   :  { %v918_v9 = vpop.f32.mrf.mxu0  ;;  %v994_v44 = vadd.f32 %v987_v16, %v803_v43 }
 0x245   :  { %v989_v6 = vpop.f32.mrf.mxu1  ;;  %v993_v10 = vadd.f32 %v918_v9, %v802_v35 }
 0x246   :  { %v995_v41 = vadd.f32 %v989_v6, %v804_v59 }
 0x247   :  { %v1067_v13 = vpop.f32.mrf.mxu0 }
 0x248   :  { %v1143_v29 = vadd.f32 %v1067_v13, %v992_v5 }
 0x249   :  { %v1138_v27 = vpop.f32.mrf.mxu1  ;;  %v1069_v25 = vpop.f32.mrf.mxu0 }
 0x24a   :  { %v1144_v12 = vadd.f32 %v1069_v25, %v993_v10  ;;  %v1145_v45 = vadd.f32 %v1138_v27, %v994_v44 }
 0x24b   :  { %v1140_v17 = vpop.f32.mrf.mxu1  ;;  %v1258_v24 = vpop.f32.mrf.mxu0 }
 0x24c   :  { %v1334_v48 = vadd.f32 %v1258_v24, %v1143_v29  ;;  %v1146_v14 = vadd.f32 %v1140_v17, %v995_v41 }
 0x24d   :  { %v1329_v26 = vpop.f32.mrf.mxu1  ;;  %v1260_v18 = vpop.f32.mrf.mxu0 }
 0x24e   :  { %v1335_v55 = vadd.f32 %v1260_v18, %v1144_v12  ;;  %v1336_v50 = vadd.f32 %v1329_v26, %v1145_v45 }
 0x24f   :  { %v1331_v57 = vpop.f32.mrf.mxu1  ;;  %v1449_v3 = vpop.f32.mrf.mxu0 }
 0x250   :  { %v1525_v60 = vadd.f32 %v1449_v3, %v1334_v48  ;;  %v1337_v4 = vadd.f32 %v1331_v57, %v1146_v14 }
 0x251   :  { %v1520_v30 = vpop.f32.mrf.mxu1  ;;  %v1451_v46 = vpop.f32.mrf.mxu0 }
 0x252   :  { %v1526_v58 = vadd.f32 %v1451_v46, %v1335_v55  ;;  %v1527_v22 = vadd.f32 %v1520_v30, %v1336_v50  ;;  %v3582_v46 = vmov 0   ;;  %v1938_v30 = vld [vmem:[%s4510_s4] sm:$0xff] }
 0x253   :  { %v1522_v11 = vpop.f32.mrf.mxu1  ;;  %v1640_v40 = vpop.f32.mrf.mxu0  ;;  %3567 = vset.pattern.permute.xlu0 %v3582_v46  ;;  %3568 = vset.pattern.permute.xlu1 %v3582_v46  ;;  %v1948_v55 = vld [vmem:[%s4511_s5] sm:$0xff] }
 0x254   :  { %v1716_v62 = vadd.f32 %v1640_v40, %v1525_v60  ;;  %v1528_v16 = vadd.f32 %v1522_v11, %v1337_v4 }
 0x255   :  { %v1711_v47 = vpop.f32.mrf.mxu1  ;;  %v1642_v56 = vpop.f32.mrf.mxu0 }
 0x256   :  { %v1717_v43 = vadd.f32 %v1642_v56, %v1526_v58  ;;  %v1718_v13 = vadd.f32 %v1711_v47, %v1527_v22 }
 0x257   :  { %v1713_v1 = vpop.f32.mrf.mxu1  ;;  %v1831_v9 = vpop.f32.mrf.mxu0 }
 0x258   :  { %v1907_v59 = vadd.f32 %v1831_v9, %v1716_v62  ;;  %v1719_v12 = vadd.f32 %v1713_v1, %v1528_v16 }
 0x259   :  { %v1902_v5 = vpop.f32.mrf.mxu1  ;;  %v1833_v10 = vpop.f32.mrf.mxu0 }
 0x25a   :  { %v1908_v44 = vadd.f32 %v1833_v10, %v1717_v43  ;;  %v1909_v6 = vadd.f32 %v1902_v5, %v1718_v13 }
 0x25b   :  { %v1904_v29 = vpop.f32.mrf.mxu1 }
 0x25c   :  { %v1911_v27 = vadd.f32 %v1908_v44, %v1907_v59  ;;  %v1910_v25 = vadd.f32 %v1904_v29, %v1719_v12 }
 0x25e   :  { %v1912_v17 = vadd.f32 %v1911_v27, %v1909_v6 }
 0x260   :  { %v1913_v3 = vadd.f32 %v1912_v17, %v1910_v25 }
 0x262   :  { %1914 = vadd.xlane.f32.xlu0 %v1913_v3 }
 0x278   :  { %1941 = vperm.xlu0 %3567, %v1938_v30  }
 0x2eb   :  { %v1915_v11 = vpop.xlane.xlu0 %1914 }
 0x2ec   :  { %v1917_v24 = vmul.f32 0.001953125, %v1915_v11 }
 0x2ee   :  { %v1918_v23 = vsub.f32 %v1907_v59, %v1917_v24  ;;  %v1919_v26 = vsub.f32 %v1908_v44, %v1917_v24  ;;  %v1920_v18 = vsub.f32 %v1909_v6, %v1917_v24  ;;  %v1921_v19 = vsub.f32 %v1910_v25, %v1917_v24 }
 0x2f0   :  { %v1922_v28 = vmul.f32 %v1918_v23, %v1918_v23  ;;  %v1923_v35 = vmul.f32 %v1919_v26, %v1919_v26  ;;  %v1924_v57 = vmul.f32 %v1920_v18, %v1920_v18  ;;  %v1925_v41 = vmul.f32 %v1921_v19, %v1921_v19 }
 0x2f2   :  { %v1926_v40 = vadd.f32 %v1923_v35, %v1922_v28 }
 0x2f3   :  { %v1942_v60 = vpop.permute.xlu0 %1941 }
 0x2f4   :  { %v1927_v45 = vadd.f32 %v1926_v40, %v1924_v57  ;;  %v4538_v57 = vmov 0.0  }
 0x2f6   :  { %v1928_v48 = vadd.f32 %v1927_v45, %v1925_v41 }
 0x2f8   :  { %1929 = vadd.xlane.f32.xlu1 %v1928_v48 }
 0x309   :  { %1951 = vperm.xlu1 %3568, %v1948_v55   ;;  %v1978_v55 = vld [vmem:[%s4512_s6] sm:$0xff] }
 0x381   :  { %v1930_v47 = vpop.xlane.xlu1 %1929 }
 0x382   :  { %v1931_v56 = vmul.f32 0.001953125, %v1930_v47 }
 0x384   :  { %v1932_v14 = vadd.f32 1e-05, %v1931_v56 }
 0x385   :  { %v1952_v4 = vpop.permute.xlu1 %1951 }
 0x386   :  { %3569 = vrsqrt.f32 %v1932_v14 }
 0x393   :  { %v3570_v50 = vpop.eup %3569 }
 0x394   :  { %v1934_v58 = vmul.f32 %v3570_v50, %v1918_v23  ;;  %v1935_v1 = vmul.f32 %v3570_v50, %v1919_v26  ;;  %v1937_v9 = vmul.f32 %v3570_v50, %v1921_v19  ;;  %v1936_v29 = vmul.f32 %v3570_v50, %v1920_v18  ;;  %v3531_v19 = vld [vmem:[%s4512_s6 + $0x8] sm:$0xff] }
 0x396   :  { %v1944_v22 = vmul.f32 %v1942_v60, %v1934_v58  ;;  %v1945_v62 = vmul.f32 %v1942_v60, %v1935_v1  ;;  %v1947_v43 = vmul.f32 %v1942_v60, %v1937_v9  ;;  %v1946_v12 = vmul.f32 %v1942_v60, %v1936_v29 }
 0x398   :  { %v1954_v5 = vadd.f32 %v1952_v4, %v1944_v22  ;;  %v1957_v10 = vadd.f32 %v1952_v4, %v1947_v43  ;;  %v1955_v16 = vadd.f32 %v1952_v4, %v1945_v62  ;;  %v1956_v6 = vadd.f32 %v1952_v4, %v1946_v12 }
 0x39a   :  { %v4255_v13 = vmax.f32 %v1954_v5, 0.0  ;;  %v4257_v59 = vmax.f32 %v1957_v10, 0.0  ;;  %v4263_v44 = vmax.f32 %v1955_v16, 0.0  ;;  %v4281_v27 = vmax.f32 %v1956_v6, 0.0 }
 0x39c   :  { %1968 = vrot.lane.b32.xlu0 %v4257_v59, %s3574_s13  ;;  %1979 = vrot.lane.b32.xlu1 %v4255_v13, %s3575_s0 }
 0x3a0   :  { %2287 = vrot.lane.b32.xlu0 %v4255_v13, %s3576_s1  ;;  %1981 = vrot.lane.b32.xlu1 %v4263_v44, %s3575_s0 }
 0x3a4   :  { %2293 = vrot.lane.b32.xlu0 %v4257_v59, %s3576_s1  ;;  %1985 = vrot.lane.b32.xlu1 %v4257_v59, %s3575_s0 }
 0x3a8   :  { %2454 = vrot.lane.b32.xlu0 %v4255_v13, %s3577_s14  ;;  %1962 = vrot.lane.b32.xlu1 %v4255_v13, %s3574_s13 }
 0x3ac   :  { %2460 = vrot.lane.b32.xlu0 %v4257_v59, %s3577_s14  ;;  %1964 = vrot.lane.b32.xlu1 %v4263_v44, %s3574_s13 }
 0x3b0   :  { %2774 = vrot.lane.b32.xlu0 %v4263_v44, %s3578_s15  ;;  %1983 = vrot.lane.b32.xlu1 %v4281_v27, %s3575_s0 }
 0x3b4   :  { %2772 = vrot.lane.b32.xlu0 %v4255_v13, %s3578_s15  ;;  %1966 = vrot.lane.b32.xlu1 %v4281_v27, %s3574_s13 }
 0x3b8   :  { %2941 = vrot.lane.b32.xlu0 %v4263_v44, %s3579_s16  ;;  %2289 = vrot.lane.b32.xlu1 %v4263_v44, %s3576_s1 }
 0x3bc   :  { %2939 = vrot.lane.b32.xlu0 %v4255_v13, %s3579_s16  ;;  %2291 = vrot.lane.b32.xlu1 %v4281_v27, %s3576_s1 }
 0x3c0   :  { %3108 = vrot.lane.b32.xlu0 %v4263_v44, %s3580_s17  ;;  %2456 = vrot.lane.b32.xlu1 %v4263_v44, %s3577_s14 }
 0x3c4   :  { %3106 = vrot.lane.b32.xlu0 %v4255_v13, %s3580_s17  ;;  %2458 = vrot.lane.b32.xlu1 %v4281_v27, %s3577_s14 }
 0x3c8   :  { %3275 = vrot.lane.b32.xlu0 %v4263_v44, %s3581_s18  ;;  %2776 = vrot.lane.b32.xlu1 %v4281_v27, %s3578_s15 }
 0x3cc   :  { %3273 = vrot.lane.b32.xlu0 %v4255_v13, %s3581_s18  ;;  %2778 = vrot.lane.b32.xlu1 %v4257_v59, %s3578_s15 }
 0x3d0   :  { %2943 = vrot.lane.b32.xlu1 %v4281_v27, %s3579_s16 }
 0x3d4   :  { %2945 = vrot.lane.b32.xlu1 %v4257_v59, %s3579_s16 }
 0x3d8   :  { %3110 = vrot.lane.b32.xlu1 %v4281_v27, %s3580_s17 }
 0x3dc   :  { %3112 = vrot.lane.b32.xlu1 %v4257_v59, %s3580_s17 }
 0x3e0   :  { %3277 = vrot.lane.b32.xlu1 %v4281_v27, %s3581_s18 }
 0x3e4   :  { %3279 = vrot.lane.b32.xlu1 %v4257_v59, %s3581_s18 }
 0x40e   :  { %v1969_v25 = vpop.permute.xlu0 %1968  ;;  %v1980_v17 = vpop.permute.xlu1 %1979 }
 0x412   :  { %v2288_v3 = vpop.permute.xlu0 %2287  ;;  %v1982_v46 = vpop.permute.xlu1 %1981 }
 0x413   :  { %v1989_v30 = vsel %vm289_vm0, %v1980_v17, %v1982_v46 }
 0x414   :  { %v1992_v11 = vmul.f32 %v1989_v30, %v3921_v20 }
 0x416   :  { %v2294_v24 = vpop.permute.xlu0 %2293  ;;  %2030 = vmatprep.subr.mxu0 %v1992_v11  ;;  %v1986_v23 = vpop.permute.xlu1 %1985 }
 0x417   :  { %v1990_v26 = vsel %vm289_vm0, %v1986_v23, %v1980_v17 }
 0x418   :  { %v1991_v18 = vmul.f32 %v1990_v26, %v3942_v31  ;;  %v3542_v26 = vld [vmem:[%s4512_s6 + $0x20] sm:$0xff] }
 0x41a   :  { %v2455_v28 = vpop.permute.xlu0 %2454  ;;  %2031 = vmatpush1.msra.mxu0 %v1991_v18  ;;  %v1963_v35 = vpop.permute.xlu1 %1962 }
 0x41b   :  { %3532 = vmatmul.mubr.msk.f32.vlgmr.msra.gmra.mxu0 %vm323_vm2, %v3531_v19  ;;  %v1973_v20 = vsel %vm249_vm1, %v1969_v25, %v1963_v35 }
 0x41c   :  { %2209 = vmatprep.mubr.f32.mxu0 %v4538_v57  ;;  %v1974_v48 = vmul.f32 %v1973_v20, %v3957_v38 }
 0x41e   :  { %v1965_v40 = vpop.permute.xlu1 %1964  ;;  %v2461_v41 = vpop.permute.xlu0 %2460 }
 0x41f   :  { %v1972_v45 = vsel %vm249_vm1, %v1963_v35, %v1965_v40  ;;  %v2465_v12 = vsel %vm813_vm4, %v2461_v41, %v2455_v28 }
 0x420   :  { %v1975_v31 = vmul.f32 %v1972_v45, %v3949_v33 }
 0x422   :  { %2175 = vmatprep.subr.mxu0 %v1975_v31  ;;  %v1984_v47 = vpop.permute.xlu1 %1983  ;;  %v2775_v33 = vpop.permute.xlu0 %2774 }
 0x423   :  { %v1987_v56 = vsel %vm289_vm0, %v1984_v47, %v1986_v23  ;;  %v1988_v14 = vsel %vm289_vm0, %v1982_v46, %v1984_v47  ;;  %2176 = vmatpush1.msra.mxu0 %v1974_v48  ;;  %v4540_v47 = vld [vmem:[#allocation2_spill] sm:$0xff] }
 0x424   :  { %v1993_v50 = vmul.f32 %v1988_v14, %v3952_v34  ;;  %v1994_v60 = vmul.f32 %v1987_v56, %v3945_v32  ;;  %3534 = vmatmul.mubr.msk.f32.vlgmr.msra.gmra.mxu0 %vm323_vm2, %v1978_v55  ;;  %v2298_v32 = vsel %vm622_vm3, %v2294_v24, %v2288_v3 }
 0x425   :  { %2372 = vmatprep.mubr.f32.mxu0 %v4538_v57 }
 0x426   :  { %2101 = vmatprep.subr.mxu1 %v1994_v60  ;;  %v1967_v38 = vpop.permute.xlu1 %1966  ;;  %v2773_v22 = vpop.permute.xlu0 %2772 }
 0x427   :  { %v1970_v58 = vsel %vm249_vm1, %v1967_v38, %v1969_v25  ;;  %v1971_v1 = vsel %vm249_vm1, %v1965_v40, %v1967_v38  ;;  %2102 = vmatpush1.msra.mxu1 %v1993_v50 }
 0x428   :  { %v1976_v9 = vmul.f32 %v1971_v1, %v3979_v49  ;;  %v1977_v34 = vmul.f32 %v1970_v58, %v3966_v42  ;;  %3533 = vmatmul.mubr.msk.f32.vlgmr.msra.gmra.mxu1 %vm323_vm2, %v3531_v19  ;;  %v2299_v42 = vmul.f32 %v2298_v32, %v3990_v54  ;;  %v3536_v49 = vld [vmem:[%s4512_s6 + $0x10] sm:$0xff]  ;;  %v3545_v19 = vld [vmem:[%s4512_s6 + $0x28] sm:$0xff]  ;;  %v4542_v58 = vld [vmem:[#allocation5_spill] sm:$0xff] }
 0x429   :  { %2280 = vmatprep.mubr.f32.mxu1 %v4538_v57 }
 0x42a   :  { %2246 = vmatprep.subr.mxu1 %v1977_v34  ;;  %v2290_v4 = vpop.permute.xlu1 %2289  ;;  %v2942_v54 = vpop.permute.xlu0 %2941 }
 0x42b   :  { %v2297_v62 = vsel %vm622_vm3, %v2288_v3, %v2290_v4  ;;  %2247 = vmatpush1.msra.mxu1 %v1976_v9  ;;  %v3551_v9 = vld [vmem:[%s4512_s6 + $0x38] sm:$0xff] }
 0x42c   :  { %v2300_v43 = vmul.f32 %v2297_v62, %v3984_v52  ;;  %3535 = vmatmul.mubr.msk.f32.vlgmr.msra.gmra.mxu1 %vm323_vm2, %v1978_v55  ;;  %v4543_v62 = vld [vmem:[#allocation8_spill] sm:$0xff] }
 0x42d   :  { %2443 = vmatprep.mubr.f32.mxu1 %v4538_v57 }
 0x42e   :  { %2338 = vmatprep.subr.mxu0 %v2300_v43  ;;  %v2292_v5 = vpop.permute.xlu1 %2291  ;;  %v2940_v46 = vpop.permute.xlu0 %2939 }
 0x42f   :  { %v2295_v10 = vsel %vm622_vm3, %v2292_v5, %v2294_v24  ;;  %v2296_v16 = vsel %vm622_vm3, %v2290_v4, %v2292_v5  ;;  %2339 = vmatpush1.msra.mxu0 %v2299_v42  ;;  %v2782_v24 = vsel %vm1155_vm5, %v2773_v22, %v2775_v33  ;;  %v4544_v42 = vld [vmem:[#allocation6_spill] sm:$0xff] }
 0x430   :  { %v2301_v52 = vmul.f32 %v2296_v16, %v3987_v53  ;;  %v2302_v29 = vmul.f32 %v2295_v10, %v4007_v61  ;;  %3537 = vmatmul.mubr.msk.f32.vlgmr.msra.gmra.mxu0 %vm323_vm2, %v3536_v49  ;;  %v2466_v53 = vmul.f32 %v2465_v12, %v4050_v36  ;;  %v3539_v61 = vld [vmem:[%s4512_s6 + $0x18] sm:$0xff] }
 0x431   :  { %2539 = vmatprep.mubr.f32.mxu0 %v4538_v57 }
 0x432   :  { %2409 = vmatprep.subr.mxu1 %v2302_v29  ;;  %v2457_v6 = vpop.permute.xlu1 %2456 }
 0x433   :  { %v2464_v25 = vsel %vm813_vm4, %v2455_v28, %v2457_v6  ;;  %2410 = vmatpush1.msra.mxu1 %v2301_v52  ;;  %v2949_v28 = vsel %vm1346_vm6, %v2940_v46, %v2942_v54  ;;  %v4545_v52 = vld [vmem:[#allocation7_spill] sm:$0xff] }
 0x434   :  { %v2467_v17 = vmul.f32 %v2464_v25, %v4017_v7  ;;  %3538 = vmatmul.mubr.msk.f32.vlgmr.msra.gmra.mxu1 %vm323_vm2, %v3536_v49 }
 0x435   :  { %2610 = vmatprep.mubr.f32.mxu1 %v4538_v57 }
 0x436   :  { %2505 = vmatprep.subr.mxu0 %v2467_v17  ;;  %v2459_v3 = vpop.permute.xlu1 %2458 }
 0x437   :  { %v2462_v30 = vsel %vm813_vm4, %v2459_v3, %v2461_v41  ;;  %v2463_v11 = vsel %vm813_vm4, %v2457_v6, %v2459_v3  ;;  %2506 = vmatpush1.msra.mxu0 %v2466_v53  ;;  %v3548_v41 = vld [vmem:[%s4512_s6 + $0x30] sm:$0xff]  ;;  %v3554_v6 = vld [vmem:[%s4512_s6 + $0x40] sm:$0xff] }
 0x438   :  { %v2468_v7 = vmul.f32 %v2463_v11, %v4056_v39  ;;  %v2469_v36 = vmul.f32 %v2462_v30, %v4053_v37  ;;  %2656 = vmatprep.subr.mxu0 %v4263_v44  ;;  %3540 = vmatmul.mubr.msk.f32.vlgmr.msra.gmra.mxu0 %vm323_vm2, %v3539_v61  ;;  %v3109_v44 = vpop.permute.xlu0 %3108 }
 0x439   :  { %2657 = vmatpush1.msra.mxu0 %v4255_v13  ;;  %2690 = vmatprep.mubr.f32.mxu0 %v4538_v57  ;;  %v2784_v13 = vmul.f32 %v2782_v24, %v4086_v21 }
 0x43a   :  { %2576 = vmatprep.subr.mxu1 %v2469_v36  ;;  %v2777_v23 = vpop.permute.xlu1 %2776 }
 0x43b   :  { %v2781_v37 = vsel %vm1155_vm5, %v2775_v33, %v2777_v23  ;;  %2577 = vmatpush1.msra.mxu1 %v2468_v7  ;;  %v4541_v33 = vld [vmem:[#allocation3_spill] sm:$0xff] }
 0x43c   :  { %v2785_v39 = vmul.f32 %v2781_v37, %v4079_v51  ;;  %2727 = vmatprep.subr.mxu1 %v4257_v59  ;;  %3541 = vmatmul.mubr.msk.f32.vlgmr.msra.gmra.mxu1 %vm323_vm2, %v3539_v61  ;;  %v3107_v20 = vpop.permute.xlu0 %3106  ;;  %v4547_v61 = vld [vmem:[#allocation9_spill] sm:$0xff] }
 0x43d   :  { %3543 = vmatmul.mubr.msk.f32.vlgmr.msra.gmra.mxu0 %vm323_vm2, %v3542_v26  ;;  %2728 = vmatpush1.msra.mxu1 %v4281_v27  ;;  %v3116_v14 = vsel %vm1537_vm7, %v3107_v20, %v3109_v44 }
 0x43e   :  { %2823 = vmatprep.subr.mxu0 %v2785_v39  ;;  %v2779_v18 = vpop.permute.xlu1 %2778  ;;  %2761 = vmatprep.mubr.f32.mxu1 %v4538_v57  ;;  %v3118_v1 = vmul.f32 %v3116_v14, %v4542_v58 }
 0x43f   :  { %v2780_v51 = vsel %vm1155_vm5, %v2777_v23, %v2779_v18  ;;  %v2783_v59 = vsel %vm1155_vm5, %v2779_v18, %v2773_v22  ;;  %2824 = vmatpush1.msra.mxu0 %v2784_v13  ;;  %2857 = vmatprep.mubr.f32.mxu0 %v4538_v57 }
 0x440   :  { %v2786_v21 = vmul.f32 %v2780_v51, %v4114_v8  ;;  %v2787_v27 = vmul.f32 %v2783_v59, %v4104_v63  ;;  %3544 = vmatmul.mubr.msk.f32.vlgmr.msra.gmra.mxu1 %vm323_vm2, %v3542_v26  ;;  %v2951_v8 = vmul.f32 %v2949_v28, %v4125_v2  ;;  %v3276_v2 = vpop.permute.xlu0 %3275 }
 0x441   :  { %3546 = vmatmul.mubr.msk.f32.vlgmr.msra.gmra.mxu0 %vm323_vm2, %v3545_v19  ;;  %2928 = vmatprep.mubr.f32.mxu1 %v4538_v57 }
 0x442   :  { %2894 = vmatprep.subr.mxu1 %v2787_v27  ;;  %v2944_v35 = vpop.permute.xlu1 %2943  ;;  %3024 = vmatprep.mubr.f32.mxu0 %v4538_v57 }
 0x443   :  { %v2948_v40 = vsel %vm1346_vm6, %v2942_v54, %v2944_v35  ;;  %2895 = vmatpush1.msra.mxu1 %v2786_v21  ;;  %v4546_v54 = vld [vmem:[#allocation10_spill] sm:$0xff] }
 0x444   :  { %v2952_v63 = vmul.f32 %v2948_v40, %v4108_v0  ;;  %3547 = vmatmul.mubr.msk.f32.vlgmr.msra.gmra.mxu1 %vm323_vm2, %v3545_v19  ;;  %v4539_v0 = vld [vmem:[#allocation4_spill] sm:$0xff]  ;;  %v3274_v32 = vpop.permute.xlu0 %3273 }
 0x445   :  { %3095 = vmatprep.mubr.f32.mxu1 %v4538_v57  ;;  %v3283_v5 = vsel %vm1728_vm8, %v3274_v32, %v3276_v2 }
 0x446   :  { %2990 = vmatprep.subr.mxu0 %v2952_v63  ;;  %v2946_v45 = vpop.permute.xlu1 %2945  ;;  %v3285_v12 = vmul.f32 %v3283_v5, %v4546_v54 }
 0x447   :  { %v2947_v31 = vsel %vm1346_vm6, %v2944_v35, %v2946_v45  ;;  %v2950_v48 = vsel %vm1346_vm6, %v2946_v45, %v2940_v46  ;;  %2991 = vmatpush1.msra.mxu0 %v2951_v8  ;;  %v4548_v46 = vld [vmem:[#allocation11_spill] sm:$0xff] }
 0x448   :  { %v2953_v55 = vmul.f32 %v2947_v31, %v4539_v0  ;;  %v2954_v56 = vmul.f32 %v2950_v48, %v4540_v47  ;;  %3549 = vmatmul.mubr.msk.f32.vlgmr.msra.gmra.mxu0 %vm323_vm2, %v3548_v41 }
 0x449   :  { %3191 = vmatprep.mubr.f32.mxu0 %v4538_v57 }
 0x44a   :  { %3061 = vmatprep.subr.mxu1 %v2954_v56  ;;  %v3111_v50 = vpop.permute.xlu1 %3110 }
 0x44b   :  { %v3115_v60 = vsel %vm1537_vm7, %v3109_v44, %v3111_v50  ;;  %3062 = vmatpush1.msra.mxu1 %v2953_v55 }
 0x44c   :  { %v3119_v38 = vmul.f32 %v3115_v60, %v4541_v33  ;;  %3550 = vmatmul.mubr.msk.f32.vlgmr.msra.gmra.mxu1 %vm323_vm2, %v3548_v41 }
 0x44d   :  { %3262 = vmatprep.mubr.f32.mxu1 %v4538_v57 }
 0x44e   :  { %3157 = vmatprep.subr.mxu0 %v3119_v38  ;;  %v3113_v34 = vpop.permute.xlu1 %3112 }
 0x44f   :  { %v3114_v4 = vsel %vm1537_vm7, %v3111_v50, %v3113_v34  ;;  %v3117_v22 = vsel %vm1537_vm7, %v3113_v34, %v3107_v20  ;;  %3158 = vmatpush1.msra.mxu0 %v3118_v1 }
 0x450   :  { %v3120_v43 = vmul.f32 %v3114_v4, %v4543_v62  ;;  %v3121_v49 = vmul.f32 %v3117_v22, %v4544_v42  ;;  %3552 = vmatmul.mubr.msk.f32.vlgmr.msra.gmra.mxu0 %vm323_vm2, %v3551_v9 }
 0x451   :  { %3358 = vmatprep.mubr.f32.mxu0 %v4538_v57 }
 0x452   :  { %3228 = vmatprep.subr.mxu1 %v3121_v49  ;;  %v3278_v10 = vpop.permute.xlu1 %3277 }
 0x453   :  { %v3282_v16 = vsel %vm1728_vm8, %v3276_v2, %v3278_v10  ;;  %3229 = vmatpush1.msra.mxu1 %v3120_v43 }
 0x454   :  { %v3286_v29 = vmul.f32 %v3282_v16, %v4545_v52  ;;  %3553 = vmatmul.mubr.msk.f32.vlgmr.msra.gmra.mxu1 %vm323_vm2, %v3551_v9 }
 0x455   :  { %3429 = vmatprep.mubr.f32.mxu1 %v4538_v57 }
 0x456   :  { %3324 = vmatprep.subr.mxu0 %v3286_v29  ;;  %v3280_v25 = vpop.permute.xlu1 %3279 }
 0x457   :  { %v3281_v17 = vsel %vm1728_vm8, %v3278_v10, %v3280_v25  ;;  %v3284_v53 = vsel %vm1728_vm8, %v3280_v25, %v3274_v32  ;;  %3325 = vmatpush1.msra.mxu0 %v3285_v12 }
 0x458   :  { %v3287_v3 = vmul.f32 %v3281_v17, %v4547_v61  ;;  %v3288_v30 = vmul.f32 %v3284_v53, %v4548_v46  ;;  %3555 = vmatmul.mubr.msk.f32.vlgmr.msra.gmra.mxu0 %vm323_vm2, %v3554_v6 }
 0x45a   :  { %3395 = vmatprep.subr.mxu1 %v3288_v30 }
 0x45b   :  { %3396 = vmatpush1.msra.mxu1 %v3287_v3 }
 0x45c   :  { %3556 = vmatmul.mubr.msk.f32.vlgmr.msra.gmra.mxu1 %vm323_vm2, %v3554_v6 }
 0x4db   :  { %v2066_v57 = vpop.f32.mrf.mxu0 }
 0x4dd   :  { %v2068_v11 = vpop.f32.mrf.mxu0 }
 0x4e4   :  { %v2211_v36 = vpop.f32.mrf.mxu0 }
 0x4e5   :  { %v2212_v35 = vadd.f32 %v2211_v36, %v2066_v57 }
 0x4e6   :  { %v2213_v23 = vpop.f32.mrf.mxu0 }
 0x4e7   :  { %v2214_v63 = vadd.f32 %v2213_v23, %v2068_v11 }
 0x4e8   :  { %v2137_v7 = vpop.f32.mrf.mxu1 }
 0x4ea   :  { %v2139_v24 = vpop.f32.mrf.mxu1 }
 0x4ec   :  { %v2282_v26 = vpop.f32.mrf.mxu1 }
 0x4ed   :  { %v2283_v8 = vadd.f32 %v2282_v26, %v2137_v7 }
 0x4ee   :  { %v2284_v37 = vpop.f32.mrf.mxu1 }
 0x4ef   :  { %v2285_v48 = vadd.f32 %v2284_v37, %v2139_v24 }
 0x4f0   :  { %v2374_v15 = vpop.f32.mrf.mxu0 }
 0x4f1   :  { %v2450_v41 = vadd.f32 %v2374_v15, %v2212_v35  ;;  %v3466_v15 = vld [vmem:[%s4513_s7] sm:$0xff] }
 0x4f2   :  { %v2376_v39 = vpop.f32.mrf.mxu0 }
 0x4f3   :  { %v2451_v0 = vadd.f32 %v2376_v39, %v2214_v63 }
 0x4f4   :  { %v2445_v13 = vpop.f32.mrf.mxu1 }
 0x4f5   :  { %v2452_v55 = vadd.f32 %v2445_v13, %v2283_v8 }
 0x4f6   :  { %v2447_v18 = vpop.f32.mrf.mxu1 }
 0x4f7   :  { %v2453_v14 = vadd.f32 %v2447_v18, %v2285_v48 }
 0x4f8   :  { %v2541_v44 = vpop.f32.mrf.mxu0 }
 0x4f9   :  { %v2617_v56 = vadd.f32 %v2541_v44, %v2450_v41 }
 0x4fa   :  { %v2543_v19 = vpop.f32.mrf.mxu0 }
 0x4fb   :  { %v2618_v50 = vadd.f32 %v2543_v19, %v2451_v0 }
 0x4fc   :  { %v2612_v51 = vpop.f32.mrf.mxu1 }
 0x4fd   :  { %v2692_v59 = vpop.f32.mrf.mxu0  ;;  %v2619_v60 = vadd.f32 %v2612_v51, %v2452_v55 }
 0x4fe   :  { %v2614_v21 = vpop.f32.mrf.mxu1  ;;  %v2768_v58 = vadd.f32 %v2692_v59, %v2617_v56 }
 0x4ff   :  { %v2694_v27 = vpop.f32.mrf.mxu0  ;;  %v2620_v9 = vadd.f32 %v2614_v21, %v2453_v14 }
 0x500   :  { %v2763_v28 = vpop.f32.mrf.mxu1  ;;  %v2769_v34 = vadd.f32 %v2694_v27, %v2618_v50 }
 0x501   :  { %v2859_v20 = vpop.f32.mrf.mxu0  ;;  %v2770_v32 = vadd.f32 %v2763_v28, %v2619_v60 }
 0x502   :  { %v2765_v40 = vpop.f32.mrf.mxu1  ;;  %v2935_v22 = vadd.f32 %v2859_v20, %v2768_v58 }
 0x503   :  { %v2861_v45 = vpop.f32.mrf.mxu0  ;;  %v2771_v49 = vadd.f32 %v2765_v40, %v2620_v9  ;;  %v3476_v40 = vld [vmem:[%s4514_s8] sm:$0xff] }
 0x504   :  { %v2930_v31 = vpop.f32.mrf.mxu1  ;;  %v2936_v62 = vadd.f32 %v2861_v45, %v2769_v34 }
 0x505   :  { %v2937_v5 = vadd.f32 %v2930_v31, %v2770_v32 }
 0x506   :  { %v2932_v2 = vpop.f32.mrf.mxu1 }
 0x507   :  { %v2938_v29 = vadd.f32 %v2932_v2, %v2771_v49 }
 0x508   :  { %v3026_v47 = vpop.f32.mrf.mxu0 }
 0x509   :  { %v3102_v10 = vadd.f32 %v3026_v47, %v2935_v22 }
 0x50a   :  { %v3028_v33 = vpop.f32.mrf.mxu0 }
 0x50b   :  { %v3103_v16 = vadd.f32 %v3028_v33, %v2936_v62 }
 0x50c   :  { %v3097_v38 = vpop.f32.mrf.mxu1 }
 0x50d   :  { %v3104_v54 = vadd.f32 %v3097_v38, %v2937_v5 }
 0x50e   :  { %v3099_v4 = vpop.f32.mrf.mxu1 }
 0x50f   :  { %v3105_v53 = vadd.f32 %v3099_v4, %v2938_v29 }
 0x510   :  { %v3193_v1 = vpop.f32.mrf.mxu0 }
 0x511   :  { %v3269_v12 = vadd.f32 %v3193_v1, %v3102_v10 }
 0x512   :  { %v3195_v43 = vpop.f32.mrf.mxu0 }
 0x513   :  { %v3270_v6 = vadd.f32 %v3195_v43, %v3103_v16 }
 0x514   :  { %v3264_v42 = vpop.f32.mrf.mxu1 }
 0x515   :  { %v3271_v61 = vadd.f32 %v3264_v42, %v3104_v54 }
 0x516   :  { %v3266_v25 = vpop.f32.mrf.mxu1 }
 0x517   :  { %v3272_v57 = vadd.f32 %v3266_v25, %v3105_v53 }
 0x518   :  { %v3360_v52 = vpop.f32.mrf.mxu0 }
 0x519   :  { %v3436_v3 = vadd.f32 %v3360_v52, %v3269_v12 }
 0x51a   :  { %v3362_v17 = vpop.f32.mrf.mxu0 }
 0x51b   :  { %v3437_v46 = vadd.f32 %v3362_v17, %v3270_v6 }
 0x51c   :  { %v3431_v30 = vpop.f32.mrf.mxu1 }
 0x51d   :  { %v3440_v11 = vadd.f32 %v3437_v46, %v3436_v3  ;;  %v3438_v7 = vadd.f32 %v3431_v30, %v3271_v61 }
 0x51e   :  { %v3433_v36 = vpop.f32.mrf.mxu1 }
 0x51f   :  { %v3441_v24 = vadd.f32 %v3440_v11, %v3438_v7  ;;  %v3439_v23 = vadd.f32 %v3433_v36, %v3272_v57 }
 0x521   :  { %v3442_v26 = vadd.f32 %v3441_v24, %v3439_v23 }
 0x523   :  { %3443 = vadd.xlane.f32.xlu0 %v3442_v26 }
 0x539   :  { %3469 = vperm.xlu0 %3567, %v3466_v15  }
 0x5ac   :  { %v3444_v37 = vpop.xlane.xlu0 %3443 }
 0x5ad   :  { %v3445_v39 = vmul.f32 0.001953125, %v3444_v37 }
 0x5af   :  { %v3446_v13 = vsub.f32 %v3436_v3, %v3445_v39  ;;  %v3447_v44 = vsub.f32 %v3437_v46, %v3445_v39  ;;  %v3448_v18 = vsub.f32 %v3438_v7, %v3445_v39  ;;  %v3449_v19 = vsub.f32 %v3439_v23, %v3445_v39 }
 0x5b1   :  { %v3450_v51 = vmul.f32 %v3446_v13, %v3446_v13  ;;  %v3451_v59 = vmul.f32 %v3447_v44, %v3447_v44  ;;  %v3452_v21 = vmul.f32 %v3448_v18, %v3448_v18  ;;  %v3453_v28 = vmul.f32 %v3449_v19, %v3449_v19 }
 0x5b3   :  { %v3454_v27 = vadd.f32 %v3451_v59, %v3450_v51 }
 0x5b4   :  { %v3470_v47 = vpop.permute.xlu0 %3469 }
 0x5b5   :  { %v3455_v35 = vadd.f32 %v3454_v27, %v3452_v21 }
 0x5b7   :  { %v3456_v20 = vadd.f32 %v3455_v35, %v3453_v28 }
 0x5b9   :  { %3457 = vadd.xlane.f32.xlu1 %v3456_v20 }
 0x5ca   :  { %3479 = vperm.xlu1 %3568, %v3476_v40  }
 0x642   :  { %v3458_v63 = vpop.xlane.xlu1 %3457 }
 0x643   :  { %v3459_v8 = vmul.f32 0.001953125, %v3458_v63 }
 0x645   :  { %v3460_v41 = vadd.f32 1e-05, %v3459_v8 }
 0x646   :  { %v3480_v60 = vpop.permute.xlu1 %3479 }
 0x647   :  { %3571 = vrsqrt.f32 %v3460_v41 }
 0x654   :  { %v3572_v45 = vpop.eup %3571 }
 0x655   :  { %v3462_v31 = vmul.f32 %v3572_v45, %v3446_v13  ;;  %v3463_v48 = vmul.f32 %v3572_v45, %v3447_v44  ;;  %v3464_v0 = vmul.f32 %v3572_v45, %v3448_v18  ;;  %v3465_v55 = vmul.f32 %v3572_v45, %v3449_v19 }
 0x657   :  { %v3472_v56 = vmul.f32 %v3470_v47, %v3462_v31  ;;  %v3473_v2 = vmul.f32 %v3470_v47, %v3463_v48  ;;  %v3474_v14 = vmul.f32 %v3470_v47, %v3464_v0  ;;  %v3475_v50 = vmul.f32 %v3470_v47, %v3465_v55 }
 0x659   :  { %v3482_v33 = vadd.f32 %v3480_v60, %v3472_v56  ;;  %v3483_v38 = vadd.f32 %v3480_v60, %v3473_v2  ;;  %v3484_v58 = vadd.f32 %v3480_v60, %v3474_v14  ;;  %v3485_v1 = vadd.f32 %v3480_v60, %v3475_v50 }
 0x65b   :  { %v3486_v9 = vmax.f32 %v3482_v33, 0.0  ;;  %v3487_v34 = vmax.f32 %v3483_v38, 0.0  ;;  %v3488_v32 = vmax.f32 %v3484_v58, 0.0  ;;  %v3489_v4 = vmax.f32 %v3485_v1, 0.0 }
 0x65d   :  { %3490 = vst [vmem:[%s4515_s9] sm:$0xff] %v3486_v9  ;;  %3491 = vst [vmem:[%s4515_s9 + $0x8] sm:$0xff] %v3487_v34 }
 0x65e   :  { %3492 = vst [vmem:[%s4515_s9 + $0x10] sm:$0xff] %v3488_v32  ;;  %3493 = vst [vmem:[%s4515_s9 + $0x18] sm:$0xff] %v3489_v4 }

</bundles_post_ra>
